<compile_context>
chip_gen: v6e
topology: v6e:2x2x1
jax: 0.10.0
libtpu: 0.0.40
codegen_flags: <defaults>
</compile_context>

<pallas_src>
import functools

import numpy as np
import jax
import jax.numpy as jnp
from jax import lax
from jax.experimental import pallas as pl
from jax.experimental.pallas import tpu as pltpu


def _round_up(x, m):
    return (x + m - 1) // m * m


def _vmem_budget_bytes():
    """Scoped-VMEM request sized to the actual part (leave ~16 MiB headroom)."""
    try:
        phys = int(pltpu.get_tpu_info().vmem_capacity_bytes)
    except Exception:
        phys = 64 * 1024 * 1024            # conservative (v7x-sized) fallback
    return int(min(phys - 16 * 1024 * 1024, 112 * 1024 * 1024))


def _gru_chunk_kernel(tile_max_smem,                   # scalar prefetch: (n_bt,) i32 in SMEM
                      emb_ref, lens_col_ref,           # streamed emb chunk, per-row lengths
                      wi_ref,                          # (D, 3*H_pad)   fused input weights [r|z|n]
                      whh_ref,                         # (H_pad, 3*H_pad) fused hidden weights [r|z|n]
                      bias_i_ref,                      # (1, 3*H_pad): [b_r, b_z, b_in] (r/z combined)
                      bhn_ref,                         # (1, H_pad):  hidden-side n bias
                      wlin_ref, blin_ref,              # (H_pad, O_pad), (1, O_pad)
                      out_ref, hn_ref,                 # outputs
                      h_ref, hs_ref, gi_ref):          # VMEM scratch
    """One (batch-tile, seq-chunk) grid step of the GRU recurrence + output Linear."""
    b_idx = pl.program_id(0)
    s_idx = pl.program_id(1)
    T_C, B_T, D = emb_ref.shape
    O = out_ref.shape[2]
    H = h_ref.shape[1]                     # H_pad (gate width, lane-aligned)

    # Reset the hidden-state carry at the start of every sequence sweep.
    @pl.when(s_idx == 0)
    def _():
        h_ref[...] = jnp.zeros_like(h_ref)

    chunk_start = s_idx * T_C
    # Per-tile max length, precomputed in the wrapper -> correct for unsorted lengths too.
    max_len = tile_max_smem[b_idx]

    @pl.when(chunk_start < max_len)
    def _compute():
        # ---- hoisted + FUSED input projection: one MXU matmul + one bias add per chunk ----
        # Leading-dim collapse (T_C, B_T, D) -> (T_C*B_T, D) is layout-trivial
        # (B_T is sublane-aligned, last dim unchanged).
        x2 = emb_ref[...].reshape(T_C * B_T, D)
        gi_ref[...] = (jnp.dot(x2, wi_ref[...], preferred_element_type=jnp.float32)
                       + bias_i_ref[...])

        b_hn = bhn_ref[...]                              # (1, H) hidden-side n bias
        rem = lens_col_ref[...] - chunk_start            # (B_T, 1) i32, hoisted out of loop

        def step(t, h):
            row = pl.multiple_of(t * B_T, 8)             # sublane-aligned chunk row
            m = t < rem                                  # (B_T, 1) bool valid mask
            # One fused recurrent matmul per step (N = 3*H); slices are 128-lane aligned.
            gh = jnp.dot(h.astype(whh_ref.dtype), whh_ref[...],
                         preferred_element_type=jnp.float32)
            r = jax.nn.sigmoid(gi_ref[pl.ds(row, B_T), 0 * H:1 * H] + gh[:, 0 * H:1 * H])
            z = jax.nn.sigmoid(gi_ref[pl.ds(row, B_T), 1 * H:2 * H] + gh[:, 1 * H:2 * H])
            n = jnp.tanh(gi_ref[pl.ds(row, B_T), 2 * H:3 * H]
                         + r * (gh[:, 2 * H:3 * H] + b_hn))
            h_new = n + z * (h - n)                      # == (1-z)*n + z*h
            hs_ref[pl.ds(row, B_T), :] = jnp.where(m, h_new, 0.0)   # zero at padded steps
            return jnp.where(m, h_new, h)                # carry h through padding

        h = lax.fori_loop(0, T_C, step, h_ref[...], unroll=min(T_C, 4))
        h_ref[...] = h

        # ---- hoisted output Linear: one lane-dense matmul per chunk ----
        # TODO(synk): advanced — interleave stripes of this matmul (and next chunk's input
        #             projection) between the recurrent steps to fill MXU idle slots.
        o2 = (jnp.dot(hs_ref[...].astype(wlin_ref.dtype), wlin_ref[...],
                      preferred_element_type=jnp.float32)
              + blin_ref[...])
        out_ref[...] = o2.reshape(T_C, B_T, O)

    @pl.when(chunk_start >= max_len)
    def _skip():
        # Chunk lies entirely past every sequence in this batch tile:
        # padded hs is zero, so linear(hs) == bias. Skip all compute.
        out_ref[...] = jnp.broadcast_to(blin_ref[...], (T_C * B_T, O)).reshape(T_C, B_T, O)

    # hn block is resident across the seq axis; write it exactly once per batch tile.
    @pl.when(s_idx == pl.num_programs(1) - 1)
    def _finalize():
        hn_ref[...] = h_ref[...]


def rnn_forward(tokens, len_x, params, *, seq_chunk=16, use_bf16=False):
    """Full forward: embedding gather (glue) + Pallas GRU/Linear kernel."""
    seq_len, batch = tokens.shape
    dim_w = params["emb"].shape[1]
    hidden = params["whh"].shape[0]
    out_sz = params["wlin"].shape[1]
    H = hidden

    mm_dtype = jnp.bfloat16 if use_bf16 else jnp.float32

    # ---- MXU / vreg friendly padded sizes ------------------------------------
    H_pad = _round_up(hidden, 128)         # lane-aligned gates, 128-multiple slices are free
    O_pad = _round_up(out_sz, 128)         # lane-dense output stores
    # B_T capped at 128 fits all generations' MXU tiles; on v7x (2 TCs) large batches
    # (>128) naturally produce >=2 "parallel" batch tiles for both cores.
    # (v6e could allow B_T=256 for very large batches; kept 128 for generation neutrality.)
    B_T = min(_round_up(batch, 8), 128)    # sublane-aligned batch tile
    B_pad = _round_up(batch, B_T)
    T_C = max(1, min(seq_chunk, seq_len))
    S_pad = _round_up(seq_len, T_C)

    # ---- glue: embedding lookup (plain JAX gather) ----------------------------
    emb_x = jnp.take(params["emb"], tokens, axis=0).astype(mm_dtype)   # (S, B, D)
    emb_x = jnp.pad(emb_x, ((0, S_pad - seq_len), (0, B_pad - batch), (0, 0)))

    lens_pad = jnp.pad(len_x.astype(jnp.int32), (0, B_pad - batch))
    lens_col = lens_pad.reshape(B_pad, 1)                              # in-kernel mask
    n_bt, n_sc = B_pad // B_T, S_pad // T_C
    # Per-tile max length (scalar prefetch) -> robust to unsorted lengths, enables
    # skipping fully-padded chunks.
    tile_max = jnp.max(lens_pad.reshape(n_bt, B_T), axis=1).astype(jnp.int32)

    def pad2(a, rows, cols):
        return jnp.pad(a, ((0, rows - a.shape[0]), (0, cols - a.shape[1])))

    wih, whh, bih, bhh = params["wih"], params["whh"], params["bih"], params["bhh"]
    # Fused per-gate weights (gate order [r, z, n], same as PyTorch), each gate padded to
    # H_pad columns so in-kernel slices land on 128-lane boundaries. Zero padding keeps the
    # padded hidden lanes / batch rows exactly 0 through the recurrence.
    wi_fused = jnp.concatenate([pad2(wih[:, g * H:(g + 1) * H], dim_w, H_pad)
                                for g in range(3)], axis=1).astype(mm_dtype)     # (D, 3H_pad)
    whh_fused = jnp.concatenate([pad2(whh[:, g * H:(g + 1) * H], H_pad, H_pad)
                                 for g in range(3)], axis=1).astype(mm_dtype)    # (H_pad, 3H_pad)
    bias_i = jnp.concatenate([
        pad2(bih[:, 0 * H:1 * H] + bhh[:, 0 * H:1 * H], 1, H_pad),   # r: combined
        pad2(bih[:, 1 * H:2 * H] + bhh[:, 1 * H:2 * H], 1, H_pad),   # z: combined
        pad2(bih[:, 2 * H:3 * H], 1, H_pad),                         # n: input part
    ], axis=1).astype(jnp.float32)                                   # (1, 3H_pad)
    b_hn = pad2(bhh[:, 2 * H:3 * H], 1, H_pad).astype(jnp.float32)   # (1, H_pad)
    wlin = pad2(params["wlin"], H_pad, O_pad).astype(mm_dtype)
    blin = pad2(params["blin"], 1, O_pad).astype(jnp.float32)

    # Constant index_map -> the same block every grid step; Pallas does not re-DMA it.
    # TODO(synk): once pipeline_mode=pl.Buffered(1) is confirmed on the target jax version,
    #             add it here to drop the redundant second weight buffer (VMEM headroom,
    #             matters most on v7x's 64 MiB).
    def wspec(shape):
        return pl.BlockSpec(shape, lambda b, s, tmax: (0,) * len(shape))

    grid_spec = pltpu.PrefetchScalarGridSpec(
        num_scalar_prefetch=1,
        grid=(n_bt, n_sc),
        in_specs=[
            pl.BlockSpec((T_C, B_T, dim_w), lambda b, s, tmax: (s, b, 0)),   # emb chunk
            pl.BlockSpec((B_T, 1),          lambda b, s, tmax: (b, 0)),      # lens column
            wspec((dim_w, 3 * H_pad)),      # fused W_ih
            wspec((H_pad, 3 * H_pad)),      # fused W_hh
            wspec((1, 3 * H_pad)),          # fused input-side biases
            wspec((1, H_pad)),              # hidden-side n bias
            wspec((H_pad, O_pad)),          # W_lin
            wspec((1, O_pad)),              # b_lin
        ],
        out_specs=(
            pl.BlockSpec((T_C, B_T, O_pad), lambda b, s, tmax: (s, b, 0)),   # out chunk
            pl.BlockSpec((B_T, H_pad),      lambda b, s, tmax: (b, 0)),      # hn (resident)
        ),
        scratch_shapes=[
            pltpu.VMEM((B_T, H_pad), jnp.float32),              # hidden-state carry
            pltpu.VMEM((T_C * B_T, H_pad), jnp.float32),        # hs chunk (for the Linear)
            pltpu.VMEM((T_C * B_T, 3 * H_pad), jnp.float32),    # fused input projection
        ],
    )

    item = 2 if use_bf16 else 4
    flops = 2 * S_pad * B_pad * (3 * dim_w * H_pad + 3 * H_pad * H_pad + H_pad * O_pad)
    transcendentals = 3 * S_pad * B_pad * H_pad
    bytes_accessed = (S_pad * B_pad * dim_w * item            # emb stream
                      + S_pad * B_pad * O_pad * 4             # out stream
                      + B_pad * H_pad * 4                     # hn
                      + (dim_w * 3 * H_pad + H_pad * 3 * H_pad + H_pad * O_pad) * item
                      + (4 * H_pad + O_pad) * 4)

    # TODO(synk): when out_size << 128 the O_pad lane padding makes the out writeback
    #             16x larger than needed; in that regime the tiny Linear could be left to
    #             XLA outside the kernel instead.
    out_pad, hn_pad = pl.pallas_call(
        _gru_chunk_kernel,
        grid_spec=grid_spec,
        out_shape=(
            jax.ShapeDtypeStruct((S_pad, B_pad, O_pad), jnp.float32),
            jax.ShapeDtypeStruct((B_pad, H_pad), jnp.float32),
        ),
        compiler_params=pltpu.CompilerParams(
            dimension_semantics=("parallel", "arbitrary"),   # batch tiles ∥, seq serial
            vmem_limit_bytes=_vmem_budget_bytes(),
        ),
        cost_estimate=pl.CostEstimate(flops=int(flops),
                                      transcendentals=int(transcendentals),
                                      bytes_accessed=int(bytes_accessed)),
    )(tile_max, emb_x, lens_col, wi_fused, whh_fused, bias_i, b_hn, wlin, blin)

    out = out_pad[:seq_len, :batch, :out_sz]
    hn = hn_pad[:batch, :hidden][None, :, :]     # (num_layers=1, batch, hidden)
    return out, hn


def init_params(key, dict_size, dim_w, hidden, out_size):
    """Deterministic init matching the module's __init__ / init_weights."""
    k = jax.random.split(key, 7)
    initrange = 0.1
    stdv = 1.0 / np.sqrt(hidden)  # nn.GRU default init range
    params = {
        "emb":  jax.random.uniform(k[0], (dict_size, dim_w), jnp.float32,
                                   -initrange, initrange),
        "wih":  jax.random.uniform(k[1], (dim_w, 3 * hidden), jnp.float32, -stdv, stdv),
        "whh":  jax.random.uniform(k[2], (hidden, 3 * hidden), jnp.float32, -stdv, stdv),
        "bih":  jax.random.uniform(k[3], (1, 3 * hidden), jnp.float32, -stdv, stdv),
        "bhh":  jax.random.uniform(k[4], (1, 3 * hidden), jnp.float32, -stdv, stdv),
        "wlin": jax.random.uniform(k[5], (hidden, out_size), jnp.float32,
                                   -initrange, initrange),
        "blin": jnp.zeros((1, out_size), jnp.float32),
    }
    return params


def ref_forward(tokens, len_x, params):
    """Pure-JAX reference (lax.scan) mirroring packed-GRU + Linear semantics."""
    seq_len, batch = tokens.shape
    hidden = params["whh"].shape[0]
    emb = jnp.take(params["emb"], tokens, axis=0)
    mask = (jnp.arange(seq_len)[:, None] < len_x[None, :]).astype(jnp.float32)[:, :, None]

    def step(h, inp):
        x_t, m_t = inp
        gi = x_t @ params["wih"] + params["bih"]
        gh = h @ params["whh"] + params["bhh"]
        i_r, i_z, i_n = jnp.split(gi, 3, axis=-1)
        h_r, h_z, h_n = jnp.split(gh, 3, axis=-1)
        r = jax.nn.sigmoid(i_r + h_r)
        z = jax.nn.sigmoid(i_z + h_z)
        n = jnp.tanh(i_n + r * h_n)
        h_new = (1.0 - z) * n + z * h
        h_next = m_t * h_new + (1.0 - m_t) * h
        return h_next, h_new * m_t

    h0 = jnp.zeros((batch, hidden), jnp.float32)
    hn, hs = lax.scan(step, h0, (emb, mask))
    out = hs @ params["wlin"] + params["blin"]
    return out, hn[None, :, :]


if __name__ == "__main__":
    # Small shapes consistent with the module's forward.
    seq_len, batch = 8, 4
    dim_w, hidden, out_size, dict_size = 16, 32, 8, 20

    key = jax.random.PRNGKey(0)
    k_tok, k_param = jax.random.split(key)

    params = init_params(k_param, dict_size, dim_w, hidden, out_size)

    # Lengths sorted descending (pack_padded_sequence enforce_sorted=True default);
    # the kernel's per-tile max handles unsorted lengths too.
    len_x = jnp.array([8, 6, 5, 3], dtype=jnp.int32)
    tokens = jax.random.randint(k_tok, (seq_len, batch), 1, dict_size, dtype=jnp.int32)
    # zero-out (padding idx) tokens past each sequence's length
    valid = jnp.arange(seq_len)[:, None] < len_x[None, :]
    tokens = jnp.where(valid, tokens, 0)

    # seq_chunk=4 -> 2 seq chunks, exercises the hidden-state carry across chunks.
    # use_bf16 left False for tight f32 parity with the reference (enable on v6e/v7x for perf).
    fwd = jax.jit(functools.partial(rnn_forward, seq_chunk=4, use_bf16=False))
    out, hn = jax.block_until_ready(fwd(tokens, len_x, params))

    out_ref, hn_ref = ref_forward(tokens, len_x, params)
    np.testing.assert_allclose(np.asarray(out), np.asarray(out_ref), rtol=1e-5, atol=1e-5)
    np.testing.assert_allclose(np.asarray(hn), np.asarray(hn_ref), rtol=1e-5, atol=1e-5)

    print("KERNEL_OK")
</pallas_src>

<mosaic_0001>
module attributes {stable_mosaic.version = 11 : i64} {
  func.func @_gru_chunk_kernel(%arg0: i32, %arg1: i32, %arg2: memref<1xi32, #tpu.memory_space<smem>>, %arg3: memref<4x8x16xf32, #tpu.memory_space<vmem>>, %arg4: memref<8x1xi32, #tpu.memory_space<vmem>>, %arg5: memref<16x384xf32, #tpu.memory_space<vmem>>, %arg6: memref<128x384xf32, #tpu.memory_space<vmem>>, %arg7: memref<1x384xf32, #tpu.memory_space<vmem>>, %arg8: memref<1x128xf32, #tpu.memory_space<vmem>>, %arg9: memref<128x128xf32, #tpu.memory_space<vmem>>, %arg10: memref<1x128xf32, #tpu.memory_space<vmem>>, %arg11: memref<4x8x128xf32, #tpu.memory_space<vmem>>, %arg12: memref<8x128xf32, #tpu.memory_space<vmem>>, %arg13: memref<8x128xf32, #tpu.memory_space<vmem>>, %arg14: memref<32x128xf32, #tpu.memory_space<vmem>>, %arg15: memref<32x384xf32, #tpu.memory_space<vmem>>) attributes {dimension_semantics = [#tpu.dimension_semantics<parallel>, #tpu.dimension_semantics<arbitrary>], iteration_bounds = array<i64: 1, 2>, scalar_prefetch = 1 : i64, scratch_operands = 3 : i64, tpu.core_type = #tpu.core_type<tc>, window_params = [{transform_indices = @transform_0, window_bounds = array<i64: 4, 8, 16>}, {transform_indices = @transform_1, window_bounds = array<i64: 8, 1>}, {pipeline_mode = #tpu.pipeline_mode<synchronous>, transform_indices = @transform_2, window_bounds = array<i64: 16, 384>}, {pipeline_mode = #tpu.pipeline_mode<synchronous>, transform_indices = @transform_3, window_bounds = array<i64: 128, 384>}, {pipeline_mode = #tpu.pipeline_mode<synchronous>, transform_indices = @transform_4, window_bounds = array<i64: 1, 384>}, {pipeline_mode = #tpu.pipeline_mode<synchronous>, transform_indices = @transform_5, window_bounds = array<i64: 1, 128>}, {pipeline_mode = #tpu.pipeline_mode<synchronous>, transform_indices = @transform_6, window_bounds = array<i64: 128, 128>}, {pipeline_mode = #tpu.pipeline_mode<synchronous>, transform_indices = @transform_7, window_bounds = array<i64: 1, 128>}, {transform_indices = @transform_8, window_bounds = array<i64: 4, 8, 128>}, {transform_indices = @transform_9, window_bounds = array<i64: 8, 128>}]} {
    %c0_i32 = arith.constant 0 : i32
    %0 = arith.cmpi eq, %arg1, %c0_i32 : i32
    %1 = arith.extui %0 : i1 to i32
    %c0_i32_0 = arith.constant 0 : i32
    %2 = arith.cmpi ne, %1, %c0_i32_0 : i32
    scf.if %2 {
      %cst = arith.constant 0.000000e+00 : f32
      %15 = vector.broadcast %cst : f32 to vector<8x128xf32>
      %c0 = arith.constant 0 : index
      %c0_4 = arith.constant 0 : index
      %16 = vector.load %arg13[%c0, %c0_4] : memref<8x128xf32, #tpu.memory_space<vmem>>, vector<8x128xf32>
      tpu.vector_store %arg13[%c0, %c0_4], %15 {strides = array<i32>} : memref<8x128xf32, #tpu.memory_space<vmem>>, vector<8x128xf32>,
    } else {
    }
    %c4_i32 = arith.constant 4 : i32
    %3 = arith.muli %arg1, %c4_i32 : i32
    %4 = arith.index_cast %arg0 : i32 to index
    %5 = memref.load %arg2[%4] : memref<1xi32, #tpu.memory_space<smem>>
    %6 = arith.cmpi slt, %3, %5 : i32
    %7 = arith.extui %6 : i1 to i32
    %c0_i32_1 = arith.constant 0 : i32
    %8 = arith.cmpi ne, %7, %c0_i32_1 : i32
    scf.if %8 {
      %c0 = arith.constant 0 : index
      %c0_4 = arith.constant 0 : index
      %c0_5 = arith.constant 0 : index
      %15 = vector.load %arg3[%c0, %c0_4, %c0_5] : memref<4x8x16xf32, #tpu.memory_space<vmem>>, vector<4x8x16xf32>
      %16 = vector.shape_cast %15 : vector<4x8x16xf32> to vector<32x16xf32>
      %c0_6 = arith.constant 0 : index
      %c0_7 = arith.constant 0 : index
      %17 = vector.load %arg5[%c0_6, %c0_7] : memref<16x384xf32, #tpu.memory_space<vmem>>, vector<16x384xf32>
      %cst = arith.constant dense<0.000000e+00> : vector<32x384xf32>
      %18 = tpu.matmul %16, %17, %cst {dimension_numbers = #tpu.dot_dimension_numbers<[1], [0], [0], [1], [0, 0, 1, 1], [], []>} : vector<32x16xf32>, vector<16x384xf32>, vector<32x384xf32> -> vector<32x384xf32>
      %c0_8 = arith.constant 0 : index
      %c0_9 = arith.constant 0 : index
      %19 = vector.load %arg7[%c0_8, %c0_9] : memref<1x384xf32, #tpu.memory_space<vmem>>, vector<1x384xf32>
      %20 = vector.broadcast %19 : vector<1x384xf32> to vector<32x384xf32>
      %21 = arith.addf %18, %20 : vector<32x384xf32>
      %c0_10 = arith.constant 0 : index
      %c0_11 = arith.constant 0 : index
      %22 = vector.load %arg15[%c0_10, %c0_11] : memref<32x384xf32, #tpu.memory_space<vmem>>, vector<32x384xf32>
      tpu.vector_store %arg15[%c0_10, %c0_11], %21 {strides = array<i32>} : memref<32x384xf32, #tpu.memory_space<vmem>>, vector<32x384xf32>,
      %c0_12 = arith.constant 0 : index
      %c0_13 = arith.constant 0 : index
      %23 = vector.load %arg8[%c0_12, %c0_13] : memref<1x128xf32, #tpu.memory_space<vmem>>, vector<1x128xf32>
      %c0_14 = arith.constant 0 : index
      %c0_15 = arith.constant 0 : index
      %24 = vector.load %arg4[%c0_14, %c0_15] : memref<8x1xi32, #tpu.memory_space<vmem>>, vector<8x1xi32>
      %25 = vector.broadcast %3 : i32 to vector<8x1xi32>
      %26 = arith.subi %24, %25 : vector<8x1xi32>
      %c0_16 = arith.constant 0 : index
      %c0_17 = arith.constant 0 : index
      %27 = vector.load %arg13[%c0_16, %c0_17] : memref<8x128xf32, #tpu.memory_space<vmem>>, vector<8x128xf32>
      %c0_i32_18 = arith.constant 0 : i32
      %c8_i32 = arith.constant 8 : i32
      %28 = arith.muli %c0_i32_18, %c8_i32 : i32
      %29 = tpu.assume_multiple %28, 8 : i32
      %30 = vector.broadcast %c0_i32_18 : i32 to vector<8x1xi32>
      %31 = arith.cmpi slt, %30, %26 : vector<8x1xi32>
      %c0_19 = arith.constant 0 : index
      %c0_20 = arith.constant 0 : index
      %32 = vector.load %arg6[%c0_19, %c0_20] : memref<128x384xf32, #tpu.memory_space<vmem>>, vector<128x384xf32>
      %cst_21 = arith.constant dense<0.000000e+00> : vector<8x384xf32>
      %33 = tpu.matmul %27, %32, %cst_21 {dimension_numbers = #tpu.dot_dimension_numbers<[1], [0], [0], [1], [0, 0, 1, 1], [], []>} : vector<8x128xf32>, vector<128x384xf32>, vector<8x384xf32> -> vector<8x384xf32>
      %34 = arith.index_cast %29 : i32 to index
      %c0_22 = arith.constant 0 : index
      %35 = vector.load %arg15[%34, %c0_22] : memref<32x384xf32, #tpu.memory_space<vmem>>, vector<8x128xf32>
      %36 = vector.extract_strided_slice %33 {offsets = [0, 0], sizes = [8, 128], strides = [1, 1]} : vector<8x384xf32> to vector<8x128xf32>
      %37 = arith.addf %35, %36 : vector<8x128xf32>
      %38 = arith.negf %37 : vector<8x128xf32>
      %39 = math.exp %38 : vector<8x128xf32>
      %cst_23 = arith.constant 1.000000e+00 : f32
      %40 = vector.broadcast %cst_23 : f32 to vector<8x128xf32>
      %41 = arith.addf %40, %39 : vector<8x128xf32>
      %42 = arith.divf %40, %41 : vector<8x128xf32>
      %43 = arith.index_cast %29 : i32 to index
      %c128 = arith.constant 128 : index
      %44 = vector.load %arg15[%43, %c128] : memref<32x384xf32, #tpu.memory_space<vmem>>, vector<8x128xf32>
      %45 = vector.extract_strided_slice %33 {offsets = [0, 128], sizes = [8, 128], strides = [1, 1]} : vector<8x384xf32> to vector<8x128xf32>
      %46 = arith.addf %44, %45 : vector<8x128xf32>
      %47 = arith.negf %46 : vector<8x128xf32>
      %48 = math.exp %47 : vector<8x128xf32>
      %cst_24 = arith.constant 1.000000e+00 : f32
      %49 = vector.broadcast %cst_24 : f32 to vector<8x128xf32>
      %50 = arith.addf %49, %48 : vector<8x128xf32>
      %51 = arith.divf %49, %50 : vector<8x128xf32>
      %52 = arith.index_cast %29 : i32 to index
      %c256 = arith.constant 256 : index
      %53 = vector.load %arg15[%52, %c256] : memref<32x384xf32, #tpu.memory_space<vmem>>, vector<8x128xf32>
      %54 = vector.extract_strided_slice %33 {offsets = [0, 256], sizes = [8, 128], strides = [1, 1]} : vector<8x384xf32> to vector<8x128xf32>
      %55 = vector.broadcast %23 : vector<1x128xf32> to vector<8x128xf32>
      %56 = arith.addf %54, %55 : vector<8x128xf32>
      %57 = arith.mulf %42, %56 : vector<8x128xf32>
      %58 = arith.addf %53, %57 : vector<8x128xf32>
      %59 = math.tanh %58 : vector<8x128xf32>
      %60 = arith.subf %27, %59 : vector<8x128xf32>
      %61 = arith.mulf %51, %60 : vector<8x128xf32>
      %62 = arith.addf %59, %61 : vector<8x128xf32>
      %cst_25 = arith.constant 0.000000e+00 : f32
      %63 = vector.shape_cast %31 : vector<8x1xi1> to vector<8x1xi1>
      %64 = vector.broadcast %63 : vector<8x1xi1> to vector<8x128xi1>
      %65 = vector.broadcast %cst_25 : f32 to vector<8x128xf32>
      %66 = arith.select %64, %62, %65 : vector<8x128xi1>, vector<8x128xf32>
      %67 = arith.index_cast %29 : i32 to index
      %c0_26 = arith.constant 0 : index
      %68 = vector.load %arg14[%67, %c0_26] : memref<32x128xf32, #tpu.memory_space<vmem>>, vector<8x128xf32>
      tpu.vector_store %arg14[%67, %c0_26], %66 {strides = array<i32>} : memref<32x128xf32, #tpu.memory_space<vmem>>, vector<8x128xf32>,
      %69 = vector.shape_cast %31 : vector<8x1xi1> to vector<8x1xi1>
      %70 = vector.broadcast %69 : vector<8x1xi1> to vector<8x128xi1>
      %71 = arith.select %70, %62, %27 : vector<8x128xi1>, vector<8x128xf32>
      %c1_i32_27 = arith.constant 1 : i32
      %c8_i32_28 = arith.constant 8 : i32
      %72 = arith.muli %c1_i32_27, %c8_i32_28 : i32
      %73 = tpu.assume_multiple %72, 8 : i32
      %74 = vector.broadcast %c1_i32_27 : i32 to vector<8x1xi32>
      %75 = arith.cmpi slt, %74, %26 : vector<8x1xi32>
      %c0_29 = arith.constant 0 : index
      %c0_30 = arith.constant 0 : index
      %76 = vector.load %arg6[%c0_29, %c0_30] : memref<128x384xf32, #tpu.memory_space<vmem>>, vector<128x384xf32>
      %cst_31 = arith.constant dense<0.000000e+00> : vector<8x384xf32>
      %77 = tpu.matmul %71, %76, %cst_31 {dimension_numbers = #tpu.dot_dimension_numbers<[1], [0], [0], [1], [0, 0, 1, 1], [], []>} : vector<8x128xf32>, vector<128x384xf32>, vector<8x384xf32> -> vector<8x384xf32>
      %78 = arith.index_cast %73 : i32 to index
      %c0_32 = arith.constant 0 : index
      %79 = vector.load %arg15[%78, %c0_32] : memref<32x384xf32, #tpu.memory_space<vmem>>, vector<8x128xf32>
      %80 = vector.extract_strided_slice %77 {offsets = [0, 0], sizes = [8, 128], strides = [1, 1]} : vector<8x384xf32> to vector<8x128xf32>
      %81 = arith.addf %79, %80 : vector<8x128xf32>
      %82 = arith.negf %81 : vector<8x128xf32>
      %83 = math.exp %82 : vector<8x128xf32>
      %cst_33 = arith.constant 1.000000e+00 : f32
      %84 = vector.broadcast %cst_33 : f32 to vector<8x128xf32>
      %85 = arith.addf %84, %83 : vector<8x128xf32>
      %86 = arith.divf %84, %85 : vector<8x128xf32>
      %87 = arith.index_cast %73 : i32 to index
      %c128_34 = arith.constant 128 : index
      %88 = vector.load %arg15[%87, %c128_34] : memref<32x384xf32, #tpu.memory_space<vmem>>, vector<8x128xf32>
      %89 = vector.extract_strided_slice %77 {offsets = [0, 128], sizes = [8, 128], strides = [1, 1]} : vector<8x384xf32> to vector<8x128xf32>
      %90 = arith.addf %88, %89 : vector<8x128xf32>
      %91 = arith.negf %90 : vector<8x128xf32>
      %92 = math.exp %91 : vector<8x128xf32>
      %cst_35 = arith.constant 1.000000e+00 : f32
      %93 = vector.broadcast %cst_35 : f32 to vector<8x128xf32>
      %94 = arith.addf %93, %92 : vector<8x128xf32>
      %95 = arith.divf %93, %94 : vector<8x128xf32>
      %96 = arith.index_cast %73 : i32 to index
      %c256_36 = arith.constant 256 : index
      %97 = vector.load %arg15[%96, %c256_36] : memref<32x384xf32, #tpu.memory_space<vmem>>, vector<8x128xf32>
      %98 = vector.extract_strided_slice %77 {offsets = [0, 256], sizes = [8, 128], strides = [1, 1]} : vector<8x384xf32> to vector<8x128xf32>
      %99 = vector.broadcast %23 : vector<1x128xf32> to vector<8x128xf32>
      %100 = arith.addf %98, %99 : vector<8x128xf32>
      %101 = arith.mulf %86, %100 : vector<8x128xf32>
      %102 = arith.addf %97, %101 : vector<8x128xf32>
      %103 = math.tanh %102 : vector<8x128xf32>
      %104 = arith.subf %71, %103 : vector<8x128xf32>
      %105 = arith.mulf %95, %104 : vector<8x128xf32>
      %106 = arith.addf %103, %105 : vector<8x128xf32>
      %cst_37 = arith.constant 0.000000e+00 : f32
      %107 = vector.shape_cast %75 : vector<8x1xi1> to vector<8x1xi1>
      %108 = vector.broadcast %107 : vector<8x1xi1> to vector<8x128xi1>
      %109 = vector.broadcast %cst_37 : f32 to vector<8x128xf32>
      %110 = arith.select %108, %106, %109 : vector<8x128xi1>, vector<8x128xf32>
      %111 = arith.index_cast %73 : i32 to index
      %c0_38 = arith.constant 0 : index
      %112 = vector.load %arg14[%111, %c0_38] : memref<32x128xf32, #tpu.memory_space<vmem>>, vector<8x128xf32>
      tpu.vector_store %arg14[%111, %c0_38], %110 {strides = array<i32>} : memref<32x128xf32, #tpu.memory_space<vmem>>, vector<8x128xf32>,
      %113 = vector.shape_cast %75 : vector<8x1xi1> to vector<8x1xi1>
      %114 = vector.broadcast %113 : vector<8x1xi1> to vector<8x128xi1>
      %115 = arith.select %114, %106, %71 : vector<8x128xi1>, vector<8x128xf32>
      %c2_i32 = arith.constant 2 : i32
      %c8_i32_39 = arith.constant 8 : i32
      %116 = arith.muli %c2_i32, %c8_i32_39 : i32
      %117 = tpu.assume_multiple %116, 8 : i32
      %118 = vector.broadcast %c2_i32 : i32 to vector<8x1xi32>
      %119 = arith.cmpi slt, %118, %26 : vector<8x1xi32>
      %c0_40 = arith.constant 0 : index
      %c0_41 = arith.constant 0 : index
      %120 = vector.load %arg6[%c0_40, %c0_41] : memref<128x384xf32, #tpu.memory_space<vmem>>, vector<128x384xf32>
      %cst_42 = arith.constant dense<0.000000e+00> : vector<8x384xf32>
      %121 = tpu.matmul %115, %120, %cst_42 {dimension_numbers = #tpu.dot_dimension_numbers<[1], [0], [0], [1], [0, 0, 1, 1], [], []>} : vector<8x128xf32>, vector<128x384xf32>, vector<8x384xf32> -> vector<8x384xf32>
      %122 = arith.index_cast %117 : i32 to index
      %c0_43 = arith.constant 0 : index
      %123 = vector.load %arg15[%122, %c0_43] : memref<32x384xf32, #tpu.memory_space<vmem>>, vector<8x128xf32>
      %124 = vector.extract_strided_slice %121 {offsets = [0, 0], sizes = [8, 128], strides = [1, 1]} : vector<8x384xf32> to vector<8x128xf32>
      %125 = arith.addf %123, %124 : vector<8x128xf32>
      %126 = arith.negf %125 : vector<8x128xf32>
      %127 = math.exp %126 : vector<8x128xf32>
      %cst_44 = arith.constant 1.000000e+00 : f32
      %128 = vector.broadcast %cst_44 : f32 to vector<8x128xf32>
      %129 = arith.addf %128, %127 : vector<8x128xf32>
      %130 = arith.divf %128, %129 : vector<8x128xf32>
      %131 = arith.index_cast %117 : i32 to index
      %c128_45 = arith.constant 128 : index
      %132 = vector.load %arg15[%131, %c128_45] : memref<32x384xf32, #tpu.memory_space<vmem>>, vector<8x128xf32>
      %133 = vector.extract_strided_slice %121 {offsets = [0, 128], sizes = [8, 128], strides = [1, 1]} : vector<8x384xf32> to vector<8x128xf32>
      %134 = arith.addf %132, %133 : vector<8x128xf32>
      %135 = arith.negf %134 : vector<8x128xf32>
      %136 = math.exp %135 : vector<8x128xf32>
      %cst_46 = arith.constant 1.000000e+00 : f32
      %137 = vector.broadcast %cst_46 : f32 to vector<8x128xf32>
      %138 = arith.addf %137, %136 : vector<8x128xf32>
      %139 = arith.divf %137, %138 : vector<8x128xf32>
      %140 = arith.index_cast %117 : i32 to index
      %c256_47 = arith.constant 256 : index
      %141 = vector.load %arg15[%140, %c256_47] : memref<32x384xf32, #tpu.memory_space<vmem>>, vector<8x128xf32>
      %142 = vector.extract_strided_slice %121 {offsets = [0, 256], sizes = [8, 128], strides = [1, 1]} : vector<8x384xf32> to vector<8x128xf32>
      %143 = vector.broadcast %23 : vector<1x128xf32> to vector<8x128xf32>
      %144 = arith.addf %142, %143 : vector<8x128xf32>
      %145 = arith.mulf %130, %144 : vector<8x128xf32>
      %146 = arith.addf %141, %145 : vector<8x128xf32>
      %147 = math.tanh %146 : vector<8x128xf32>
      %148 = arith.subf %115, %147 : vector<8x128xf32>
      %149 = arith.mulf %139, %148 : vector<8x128xf32>
      %150 = arith.addf %147, %149 : vector<8x128xf32>
      %cst_48 = arith.constant 0.000000e+00 : f32
      %151 = vector.shape_cast %119 : vector<8x1xi1> to vector<8x1xi1>
      %152 = vector.broadcast %151 : vector<8x1xi1> to vector<8x128xi1>
      %153 = vector.broadcast %cst_48 : f32 to vector<8x128xf32>
      %154 = arith.select %152, %150, %153 : vector<8x128xi1>, vector<8x128xf32>
      %155 = arith.index_cast %117 : i32 to index
      %c0_49 = arith.constant 0 : index
      %156 = vector.load %arg14[%155, %c0_49] : memref<32x128xf32, #tpu.memory_space<vmem>>, vector<8x128xf32>
      tpu.vector_store %arg14[%155, %c0_49], %154 {strides = array<i32>} : memref<32x128xf32, #tpu.memory_space<vmem>>, vector<8x128xf32>,
      %157 = vector.shape_cast %119 : vector<8x1xi1> to vector<8x1xi1>
      %158 = vector.broadcast %157 : vector<8x1xi1> to vector<8x128xi1>
      %159 = arith.select %158, %150, %115 : vector<8x128xi1>, vector<8x128xf32>
      %c3_i32 = arith.constant 3 : i32
      %c8_i32_50 = arith.constant 8 : i32
      %160 = arith.muli %c3_i32, %c8_i32_50 : i32
      %161 = tpu.assume_multiple %160, 8 : i32
      %162 = vector.broadcast %c3_i32 : i32 to vector<8x1xi32>
      %163 = arith.cmpi slt, %162, %26 : vector<8x1xi32>
      %c0_51 = arith.constant 0 : index
      %c0_52 = arith.constant 0 : index
      %164 = vector.load %arg6[%c0_51, %c0_52] : memref<128x384xf32, #tpu.memory_space<vmem>>, vector<128x384xf32>
      %cst_53 = arith.constant dense<0.000000e+00> : vector<8x384xf32>
      %165 = tpu.matmul %159, %164, %cst_53 {dimension_numbers = #tpu.dot_dimension_numbers<[1], [0], [0], [1], [0, 0, 1, 1], [], []>} : vector<8x128xf32>, vector<128x384xf32>, vector<8x384xf32> -> vector<8x384xf32>
      %166 = arith.index_cast %161 : i32 to index
      %c0_54 = arith.constant 0 : index
      %167 = vector.load %arg15[%166, %c0_54] : memref<32x384xf32, #tpu.memory_space<vmem>>, vector<8x128xf32>
      %168 = vector.extract_strided_slice %165 {offsets = [0, 0], sizes = [8, 128], strides = [1, 1]} : vector<8x384xf32> to vector<8x128xf32>
      %169 = arith.addf %167, %168 : vector<8x128xf32>
      %170 = arith.negf %169 : vector<8x128xf32>
      %171 = math.exp %170 : vector<8x128xf32>
      %cst_55 = arith.constant 1.000000e+00 : f32
      %172 = vector.broadcast %cst_55 : f32 to vector<8x128xf32>
      %173 = arith.addf %172, %171 : vector<8x128xf32>
      %174 = arith.divf %172, %173 : vector<8x128xf32>
      %175 = arith.index_cast %161 : i32 to index
      %c128_56 = arith.constant 128 : index
      %176 = vector.load %arg15[%175, %c128_56] : memref<32x384xf32, #tpu.memory_space<vmem>>, vector<8x128xf32>
      %177 = vector.extract_strided_slice %165 {offsets = [0, 128], sizes = [8, 128], strides = [1, 1]} : vector<8x384xf32> to vector<8x128xf32>
      %178 = arith.addf %176, %177 : vector<8x128xf32>
      %179 = arith.negf %178 : vector<8x128xf32>
      %180 = math.exp %179 : vector<8x128xf32>
      %cst_57 = arith.constant 1.000000e+00 : f32
      %181 = vector.broadcast %cst_57 : f32 to vector<8x128xf32>
      %182 = arith.addf %181, %180 : vector<8x128xf32>
      %183 = arith.divf %181, %182 : vector<8x128xf32>
      %184 = arith.index_cast %161 : i32 to index
      %c256_58 = arith.constant 256 : index
      %185 = vector.load %arg15[%184, %c256_58] : memref<32x384xf32, #tpu.memory_space<vmem>>, vector<8x128xf32>
      %186 = vector.extract_strided_slice %165 {offsets = [0, 256], sizes = [8, 128], strides = [1, 1]} : vector<8x384xf32> to vector<8x128xf32>
      %187 = vector.broadcast %23 : vector<1x128xf32> to vector<8x128xf32>
      %188 = arith.addf %186, %187 : vector<8x128xf32>
      %189 = arith.mulf %174, %188 : vector<8x128xf32>
      %190 = arith.addf %185, %189 : vector<8x128xf32>
      %191 = math.tanh %190 : vector<8x128xf32>
      %192 = arith.subf %159, %191 : vector<8x128xf32>
      %193 = arith.mulf %183, %192 : vector<8x128xf32>
      %194 = arith.addf %191, %193 : vector<8x128xf32>
      %cst_59 = arith.constant 0.000000e+00 : f32
      %195 = vector.shape_cast %163 : vector<8x1xi1> to vector<8x1xi1>
      %196 = vector.broadcast %195 : vector<8x1xi1> to vector<8x128xi1>
      %197 = vector.broadcast %cst_59 : f32 to vector<8x128xf32>
      %198 = arith.select %196, %194, %197 : vector<8x128xi1>, vector<8x128xf32>
      %199 = arith.index_cast %161 : i32 to index
      %c0_60 = arith.constant 0 : index
      %200 = vector.load %arg14[%199, %c0_60] : memref<32x128xf32, #tpu.memory_space<vmem>>, vector<8x128xf32>
      tpu.vector_store %arg14[%199, %c0_60], %198 {strides = array<i32>} : memref<32x128xf32, #tpu.memory_space<vmem>>, vector<8x128xf32>,
      %201 = vector.shape_cast %163 : vector<8x1xi1> to vector<8x1xi1>
      %202 = vector.broadcast %201 : vector<8x1xi1> to vector<8x128xi1>
      %203 = arith.select %202, %194, %159 : vector<8x128xi1>, vector<8x128xf32>
      %c4_i32_61 = arith.constant 4 : i32
      %c0_62 = arith.constant 0 : index
      %c0_63 = arith.constant 0 : index
      %204 = vector.load %arg13[%c0_62, %c0_63] : memref<8x128xf32, #tpu.memory_space<vmem>>, vector<8x128xf32>
      tpu.vector_store %arg13[%c0_62, %c0_63], %203 {strides = array<i32>} : memref<8x128xf32, #tpu.memory_space<vmem>>, vector<8x128xf32>,
      %c0_64 = arith.constant 0 : index
      %c0_65 = arith.constant 0 : index
      %205 = vector.load %arg14[%c0_64, %c0_65] : memref<32x128xf32, #tpu.memory_space<vmem>>, vector<32x128xf32>
      %c0_66 = arith.constant 0 : index
      %c0_67 = arith.constant 0 : index
      %206 = vector.load %arg9[%c0_66, %c0_67] : memref<128x128xf32, #tpu.memory_space<vmem>>, vector<128x128xf32>
      %cst_68 = arith.constant dense<0.000000e+00> : vector<32x128xf32>
      %207 = tpu.matmul %205, %206, %cst_68 {dimension_numbers = #tpu.dot_dimension_numbers<[1], [0], [0], [1], [0, 0, 1, 1], [], []>} : vector<32x128xf32>, vector<128x128xf32>, vector<32x128xf32> -> vector<32x128xf32>
      %c0_69 = arith.constant 0 : index
      %c0_70 = arith.constant 0 : index
      %208 = vector.load %arg10[%c0_69, %c0_70] : memref<1x128xf32, #tpu.memory_space<vmem>>, vector<1x128xf32>
      %209 = vector.broadcast %208 : vector<1x128xf32> to vector<32x128xf32>
      %210 = arith.addf %207, %209 : vector<32x128xf32>
      %211 = vector.shape_cast %210 : vector<32x128xf32> to vector<4x8x128xf32>
      %c0_71 = arith.constant 0 : index
      %c0_72 = arith.constant 0 : index
      %c0_73 = arith.constant 0 : index
      %212 = vector.load %arg11[%c0_71, %c0_72, %c0_73] : memref<4x8x128xf32, #tpu.memory_space<vmem>>, vector<4x8x128xf32>
      tpu.vector_store %arg11[%c0_71, %c0_72, %c0_73], %211 {strides = array<i32>} : memref<4x8x128xf32, #tpu.memory_space<vmem>>, vector<4x8x128xf32>,
    } else {
    }
    %9 = arith.cmpi sge, %3, %5 : i32
    %10 = arith.extui %9 : i1 to i32
    %c0_i32_2 = arith.constant 0 : i32
    %11 = arith.cmpi ne, %10, %c0_i32_2 : i32
    scf.if %11 {
      %c0 = arith.constant 0 : index
      %c0_4 = arith.constant 0 : index
      %15 = vector.load %arg10[%c0, %c0_4] : memref<1x128xf32, #tpu.memory_space<vmem>>, vector<1x128xf32>
      %16 = vector.shape_cast %15 : vector<1x128xf32> to vector<1x128xf32>
      %17 = vector.broadcast %16 : vector<1x128xf32> to vector<32x128xf32>
      %18 = vector.shape_cast %17 : vector<32x128xf32> to vector<4x8x128xf32>
      %c0_5 = arith.constant 0 : index
      %c0_6 = arith.constant 0 : index
      %c0_7 = arith.constant 0 : index
      %19 = vector.load %arg11[%c0_5, %c0_6, %c0_7] : memref<4x8x128xf32, #tpu.memory_space<vmem>>, vector<4x8x128xf32>
      tpu.vector_store %arg11[%c0_5, %c0_6, %c0_7], %18 {strides = array<i32>} : memref<4x8x128xf32, #tpu.memory_space<vmem>>, vector<4x8x128xf32>,
    } else {
    }
    %c1_i32 = arith.constant 1 : i32
    %12 = arith.cmpi eq, %arg1, %c1_i32 : i32
    %13 = arith.extui %12 : i1 to i32
    %c0_i32_3 = arith.constant 0 : i32
    %14 = arith.cmpi ne, %13, %c0_i32_3 : i32
    scf.if %14 {
      %c0 = arith.constant 0 : index
      %c0_4 = arith.constant 0 : index
      %15 = vector.load %arg13[%c0, %c0_4] : memref<8x128xf32, #tpu.memory_space<vmem>>, vector<8x128xf32>
      %c0_5 = arith.constant 0 : index
      %c0_6 = arith.constant 0 : index
      %16 = vector.load %arg12[%c0_5, %c0_6] : memref<8x128xf32, #tpu.memory_space<vmem>>, vector<8x128xf32>
      tpu.vector_store %arg12[%c0_5, %c0_6], %15 {strides = array<i32>} : memref<8x128xf32, #tpu.memory_space<vmem>>, vector<8x128xf32>,
    } else {
    }
    return
  }
  func.func @transform_0(%arg0: i32, %arg1: i32, %arg2: memref<1xi32, #tpu.memory_space<smem>>) -> (i32, i32, i32) {
    %c0_i32 = arith.constant 0 : i32
    %c0_i32_0 = arith.constant 0 : i32
    return %arg1, %arg0, %c0_i32 : i32, i32, i32
  }
  func.func @transform_1(%arg0: i32, %arg1: i32, %arg2: memref<1xi32, #tpu.memory_space<smem>>) -> (i32, i32) {
    %c0_i32 = arith.constant 0 : i32
    %c0_i32_0 = arith.constant 0 : i32
    return %arg0, %c0_i32 : i32, i32
  }
  func.func @transform_2(%arg0: i32, %arg1: i32, %arg2: memref<1xi32, #tpu.memory_space<smem>>) -> (i32, i32) {
    %c0_i32 = arith.constant 0 : i32
    %c0_i32_0 = arith.constant 0 : i32
    %c0_i32_1 = arith.constant 0 : i32
    return %c0_i32, %c0_i32_0 : i32, i32
  }
  func.func @transform_3(%arg0: i32, %arg1: i32, %arg2: memref<1xi32, #tpu.memory_space<smem>>) -> (i32, i32) {
    %c0_i32 = arith.constant 0 : i32
    %c0_i32_0 = arith.constant 0 : i32
    %c0_i32_1 = arith.constant 0 : i32
    return %c0_i32, %c0_i32_0 : i32, i32
  }
  func.func @transform_4(%arg0: i32, %arg1: i32, %arg2: memref<1xi32, #tpu.memory_space<smem>>) -> (i32, i32) {
    %c0_i32 = arith.constant 0 : i32
    %c0_i32_0 = arith.constant 0 : i32
    %c0_i32_1 = arith.constant 0 : i32
    return %c0_i32, %c0_i32_0 : i32, i32
  }
  func.func @transform_5(%arg0: i32, %arg1: i32, %arg2: memref<1xi32, #tpu.memory_space<smem>>) -> (i32, i32) {
    %c0_i32 = arith.constant 0 : i32
    %c0_i32_0 = arith.constant 0 : i32
    %c0_i32_1 = arith.constant 0 : i32
    return %c0_i32, %c0_i32_0 : i32, i32
  }
  func.func @transform_6(%arg0: i32, %arg1: i32, %arg2: memref<1xi32, #tpu.memory_space<smem>>) -> (i32, i32) {
    %c0_i32 = arith.constant 0 : i32
    %c0_i32_0 = arith.constant 0 : i32
    %c0_i32_1 = arith.constant 0 : i32
    return %c0_i32, %c0_i32_0 : i32, i32
  }
  func.func @transform_7(%arg0: i32, %arg1: i32, %arg2: memref<1xi32, #tpu.memory_space<smem>>) -> (i32, i32) {
    %c0_i32 = arith.constant 0 : i32
    %c0_i32_0 = arith.constant 0 : i32
    %c0_i32_1 = arith.constant 0 : i32
    return %c0_i32, %c0_i32_0 : i32, i32
  }
  func.func @transform_8(%arg0: i32, %arg1: i32, %arg2: memref<1xi32, #tpu.memory_space<smem>>) -> (i32, i32, i32) {
    %c0_i32 = arith.constant 0 : i32
    %c0_i32_0 = arith.constant 0 : i32
    return %arg1, %arg0, %c0_i32 : i32, i32, i32
  }
  func.func @transform_9(%arg0: i32, %arg1: i32, %arg2: memref<1xi32, #tpu.memory_space<smem>>) -> (i32, i32) {
    %c0_i32 = arith.constant 0 : i32
    %c0_i32_0 = arith.constant 0 : i32
    return %arg0, %c0_i32 : i32, i32
  }
}

</mosaic_0001>

<bundles_post_ra>
// kernel: rnn_forward.1
= control target key start
LH: loop header
LB: loop body
LE: loop exit
PB: predicated region body
PF: predicated region fallthrough
CT: control target
= control target key end

     0   :  { %s2289_s15 = smov 0   ;;  %s2291_s16 = smov 0   ;;  %s3075_s0 = inlined_call_operand.<no memory space> [shape: s32[1], index: 0, kind: input, shape index: {}]   ;;  %s3076_s1 = inlined_call_operand.vmem [shape: f32[8,8,16], index: 1, kind: input, shape index: {}]   ;;  %s3077_s2 = inlined_call_operand.vmem [shape: s32[8,1], index: 2, kind: input, shape index: {}]   ;;  %s3078_s3 = inlined_call_operand.vmem [shape: f32[16,384], index: 3, kind: input, shape index: {}]   ;;  %s3079_s4 = inlined_call_operand.vmem [shape: f32[128,384], index: 4, kind: input, shape index: {}]   ;;  %s3080_s5 = inlined_call_operand.vmem [shape: f32[1,384], index: 5, kind: input, shape index: {}]   ;;  %s3081_s6 = inlined_call_operand.vmem [shape: f32[1,128], index: 6, kind: input, shape index: {}]   ;;  %s3082_s7 = inlined_call_operand.vmem [shape: f32[128,128], index: 7, kind: input, shape index: {}]   ;;  %s3083_s8 = inlined_call_operand.vmem [shape: f32[1,128], index: 8, kind: input, shape index: {}]   ;;  %s3084_s9 = inlined_call_operand.vmem [shape: f32[8,8,128], index: 9, kind: output, shape index: {0}]   ;;  %s3085_s10 = inlined_call_operand.vmem [shape: f32[8,128], index: 10, kind: output, shape index: {1}]  }
   0x1   :  { %16 = sst [smem:[#allocation6]] %s3075_s0  ;;  %s2293_s17 = smov 0  }
   0x2 LB: > { %s31_s0 = sadd.s32 1, %s2221_s16  ;;  %p1815_p0 = scmp.ge.s32.totalorder %s2225_s17, 1  ;;  %s2225_s17 = sphi %s2293_s17, %s22_s17   ;;  %s2221_s16 = sphi %s2291_s16, %s3134_s16   ;;  %s2217_s15 = sphi %s2289_s15, %s3133_s15  }
   0x3   : > { %p32_p1 = scmp.ge.s32.totalorder %s31_s0, 2  ;;  %p321_p2 = scmp.lt.s32.totalorder %s2225_s17, 3 }
   0x5   : > { %s3136_s0 = smov (%p32_p1, %s31_s0), 0  ;;  %p322_p3 = pnand %p1815_p0, %p321_p2 }
   0x6   : > { %s2310_s18 = sshll.u32 (!%p322_p3), %s2217_s15, 2  ;;  %p1820_p5 = scmp.ne.s32.totalorder (!%p322_p3), %s2217_s15, 0 }
   0x7   : > { %325 = sbr.rel (%p322_p3) target bundleno = 1290 (0x50a), region = 52  ;;  %p372_p4 = scmp.lt.s32.totalorder (!%p322_p3), %s2310_s18, 7 }
   0xc   : > { %s373_s19 = scalar_select %p372_p4, %s2310_s18, 7 }
   0xd   : > { %400 = sbr.rel (%p1820_p5) target bundleno = 20 (0x14), region = 56 }
   0xe   : > { %s1817_s20 = sshll.u32 %s373_s19, 3 }
   0xf   : > { %s2317_s23 = scalar_lea.vmem %s3076_s1, %s1817_s20  ;;  %s2322_s26 = scalar_lea.vmem %s3084_s9, %s1817_s20 }
  0x12   : > { %v2227_v0 = vmov 0.0  }
  0x13   : > { %401 = vst [vmem:[#allocation2] sm:$0xff] %v2227_v0 }
  0x14 PF: > { %s2325_s27 = sld [smem:[#allocation6]] }
  0x1a   : > { %p1822_p6 = scmp.ge.s32.totalorder %s2310_s18, %s2325_s27 }
  0x1c   : > { %407 = sbr.rel (%p1822_p6) target bundleno = 1271 (0x4f7), region = 60 }
  0x21   : > { %v2332_v1 = vld [vmem:[%s3079_s4 + $0x170] sm:$0xff]  ;;  %v2337_v2 = vld [vmem:[%s3079_s4 + $0x168] sm:$0xff]  ;;  %v2342_v3 = vld [vmem:[%s3079_s4 + $0x158] sm:$0xff]  ;;  %v3090_v5 = vmov 0.0   ;;  %v3086_v9 = vmov 0   ;;  %vm435_vm0 = vcmask 130048   ;;  %v636_v40 = vstv %s2310_s18 }
  0x22   : > { %3101 = vst [vmem:[#allocation7_spill] sm:$0xff] %v2332_v1  ;;  %688 = vmatprep.subr.mxu0 %v2332_v1  ;;  %v2348_v4 = vld [vmem:[%s3079_s4 + $0x150] sm:$0xff]  ;;  %512 = vmatprep.mubr.f32.mxu1 %v3090_v5  ;;  %v2355_v6 = vld [vmem:[%s3079_s4 + $0x140] sm:$0xff]  ;;  %v2362_v7 = vld [vmem:[%s3079_s4 + $0x138] sm:$0xff]  ;;  %vm2230_vm3 = vmmov 0  }
  0x23   : > { %689 = vmatpush1.msra.mxu0 %v2337_v2  ;;  %752 = vmatprep.mubr.f32.mxu0 %v3090_v5  ;;  %v416_v8 = vld [vmem:[%s3078_s3 + $0x20] sm:$0xff]  ;;  %v2372_v10 = vld [vmem:[%s3079_s4 + $0x128] sm:$0xff]  ;;  %v415_v11 = vld [vmem:[%s3078_s3 + $0x18] sm:$0xff] }
  0x24   : > { %690 = vmatprep.subr.mxu0 %v2342_v3  ;;  %2161 = vset.pattern.permute.xlu0 %v3086_v9  ;;  %v2381_v12 = vld [vmem:[%s3079_s4 + $0x120] sm:$0xff]  ;;  %v413_v13 = vld [vmem:[%s3078_s3 + $0x8] sm:$0xff]  ;;  %v2393_v15 = vld [vmem:[%s3079_s4 + $0x110] sm:$0xff] }
  0x25   : > { %691 = vmatpush1.msra.mxu0 %v2348_v4  ;;  %476 = vmatprep.subr.mxu1 %v416_v8  ;;  %v412_v14 = vld [vmem:[%s3078_s3] sm:$0xff]  ;;  %v2400_v17 = vld [vmem:[%s3079_s4 + $0x108] sm:$0xff]  ;;  %v2409_v19 = vld [vmem:[%s3079_s4 + $0xf8] sm:$0xff] }
  0x26   : > { %692 = vmatprep.subr.mxu0 %v2355_v6  ;;  %477 = vmatpush1.msra.mxu1 %v415_v11  ;;  %v408_v16 = vld [vmem:[%s2317_s23] sm:$0xff]  ;;  %v417_v18 = vld [vmem:[%s3078_s3 + $0x28] sm:$0xff]  ;;  %v2416_v20 = vld [vmem:[%s3079_s4 + $0xf0] sm:$0xff] }
  0x27   : > { %693 = vmatpush1.msra.mxu0 %v2362_v7  ;;  %478 = vmatprep.subr.mxu1 %v413_v13  ;;  %v409_v21 = vld [vmem:[%s2317_s23 + $0x8] sm:$0xff]  ;;  %v2423_v22 = vld [vmem:[%s3079_s4 + $0xe0] sm:$0xff]  ;;  %v2429_v23 = vld [vmem:[%s3079_s4 + $0xd8] sm:$0xff]  ;;  %v420_v13 = vlaneseq }
  0x28   : > { %694 = vmatprep.subr.mxu0 %v2372_v10  ;;  %479 = vmatpush1.msra.mxu1 %v412_v14  ;;  %v414_v24 = vld [vmem:[%s3078_s3 + $0x10] sm:$0xff]  ;;  %v2439_v25 = vld [vmem:[%s3079_s4 + $0xc8] sm:$0xff]  ;;  %v2446_v26 = vld [vmem:[%s3079_s4 + $0xc0] sm:$0xff] }
  0x29   : > { %695 = vmatpush1.msra.mxu0 %v2381_v12  ;;  %1823 = vmatmul.mubr.msk.f32.vlgmr.msra.gmra.mxu1 %vm435_vm0, %v408_v16  ;;  %v2450_v27 = vld [vmem:[%s2317_s23 + $0x10] sm:$0xff]  ;;  %v2462_v29 = vld [vmem:[%s3079_s4 + $0xa8] sm:$0xff]  ;;  %v2468_v30 = vld [vmem:[%s3079_s4 + $0x98] sm:$0xff]  ;;  %v421_v14 = vshrl.u32 %v420_v13, 7 }
  0x2a   : > { %696 = vmatprep.subr.mxu0 %v2393_v15  ;;  %1945 = vmatprep.subr.mxu1 %v417_v18  ;;  %v2456_v28 = vld [vmem:[%s3079_s4 + $0xb0] sm:$0xff]  ;;  %v2480_v32 = vld [vmem:[%s2317_s23 + $0x18] sm:$0xff]  ;;  %v2486_v33 = vld [vmem:[%s3079_s4 + $0x80] sm:$0xff] }
  0x2b   : > { %697 = vmatpush1.msra.mxu0 %v2400_v17  ;;  %1946 = vmatpush3.msra.mxu1 %v417_v18  ;;  %v2476_v31 = vld [vmem:[%s3079_s4 + $0x90] sm:$0xff]  ;;  %v2493_v34 = vld [vmem:[%s3079_s4 + $0x78] sm:$0xff]  ;;  %v2500_v35 = vld [vmem:[%s3079_s4 + $0x68] sm:$0xff]  ;;  %v430_v13 = vsub.s32 2, %v421_v14 }
  0x2c   : > { %698 = vmatprep.subr.mxu0 %v2409_v19  ;;  %518 = vmatprep.mubr.f32.mxu1 %v3090_v5  ;;  %v2508_v36 = vld [vmem:[%s3079_s4 + $0x60] sm:$0xff]  ;;  %v2515_v37 = vld [vmem:[%s3079_s4 + $0x50] sm:$0xff]  ;;  %v2520_v38 = vld [vmem:[%s3079_s4 + $0x178] sm:$0xff] }
  0x2d   : > { %699 = vmatpush1.msra.mxu0 %v2416_v20  ;;  %1824 = vmatmul.mubr.msk.f32.gmra.mxu1 %vm435_vm0, %v409_v21  ;;  %v635_v39 = vld [vmem:[%s3077_s2] sm:$0xff]  ;;  %v2530_v41 = vld [vmem:[%s3079_s4 + $0x48] sm:$0xff]  ;;  %v2536_v42 = vld [vmem:[%s3079_s4 + $0x38] sm:$0xff] }
  0x2e   : > { %700 = vmatprep.subr.mxu0 %v2423_v22  ;;  %524 = vmatprep.mubr.f32.mxu1 %v3090_v5  ;;  %v2542_v43 = vld [vmem:[%s3079_s4 + $0x160] sm:$0xff]  ;;  %v2548_v44 = vld [vmem:[%s3079_s4 + $0x30] sm:$0xff]  ;;  %v2551_v45 = vsub.s32 %v635_v39, %v636_v40  ;;  %v2563_v47 = vld [vmem:[%s3079_s4 + $0x148] sm:$0xff] }
  0x2f   : > { %701 = vmatpush1.msra.mxu0 %v2429_v23  ;;  %1947 = vmatprep.subr.mxu1 %v414_v24  ;;  %v2557_v46 = vld [vmem:[%s3079_s4 + $0x20] sm:$0xff]  ;;  %v2569_v48 = vld [vmem:[%s3079_s4 + $0x18] sm:$0xff]  ;;  %v2576_v49 = vld [vmem:[%s3079_s4 + $0x8] sm:$0xff] }
  0x30   : > { %702 = vmatprep.subr.mxu0 %v2439_v25  ;;  %1948 = vmatpush3.msra.mxu1 %v414_v24  ;;  %3102 = vst [vmem:[#allocation8_spill] sm:$0xff] %v2551_v45  ;;  %3103 = vst [vmem:[#allocation9_spill] sm:$0xff] %v2557_v46  ;;  %v2582_v50 = vld [vmem:[%s3079_s4 + $0x130] sm:$0xff]  ;;  %v2588_v51 = vld [vmem:[%s3079_s4] sm:$0xff]  ;;  %vm639_vm1 = vcmp.gt.s32.totalorder %v2551_v45, 0  ;;  %vm870_vm2 = vcmp.gt.s32.totalorder %v2551_v45, 1 }
  0x31   : > { %703 = vmatpush1.msra.mxu0 %v2446_v26  ;;  %1825 = vmatmul.mubr.msk.f32.gmra.mxu1 %vm435_vm0, %v2450_v27  ;;  %3104 = vst [vmem:[#allocation10_spill] sm:$0xff] %v2569_v48  ;;  %3105 = vst [vmem:[#allocation11_spill] sm:$0xff] %v2576_v49  ;;  %v2593_v52 = vld [vmem:[#allocation2] sm:$0xff]  ;;  %v2599_v53 = vld [vmem:[%s3079_s4 + $0x118] sm:$0xff]  ;;  %v862_v55 = vsel %vm639_vm1, 1, %v3086_v9  ;;  %v1087_v58 = vsel %vm870_vm2, 1, %v3086_v9 }
  0x32   : > { %704 = vmatprep.subr.mxu0 %v2456_v28  ;;  %530 = vmatprep.mubr.f32.mxu1 %v3090_v5  ;;  %3106 = vst [vmem:[#allocation12_spill] sm:$0xff] %v2588_v51  ;;  %v2608_v54 = vld [vmem:[%s3079_s4 + $0x100] sm:$0xff]  ;;  %v2618_v56 = vld [vmem:[%s3079_s4 + $0xe8] sm:$0xff]  ;;  %v2627_v57 = vld [vmem:[%s3079_s4 + $0xd0] sm:$0xff]  ;;  %v426_v24 = vsub.s32 1, %v421_v14 }
  0x33   : > { %705 = vmatpush1.msra.mxu0 %v2462_v29  ;;  %1955 = vmatprep.subr.mxu1 %v3090_v5  ;;  %v2639_v59 = vld [vmem:[%s3079_s4 + $0xb8] sm:$0xff]  ;;  %v2647_v60 = vld [vmem:[%s3079_s4 + $0xa0] sm:$0xff]  ;;  %v2656_v61 = vld [vmem:[%s3079_s4 + $0x88] sm:$0xff] }
  0x34   : > { %706 = vmatprep.subr.mxu0 %v2468_v30  ;;  %2162 = vset.pattern.permute.xlu1 %v3086_v9  ;;  %v2665_v62 = vld [vmem:[%s3079_s4 + $0x70] sm:$0xff]  ;;  %v2674_v63 = vld [vmem:[%s3079_s4 + $0x58] sm:$0xff]  ;;  %v2683_v0 = vld [vmem:[%s3079_s4 + $0x40] sm:$0xff] }
  0x35   : > { %707 = vmatpush1.msra.mxu0 %v2476_v31  ;;  %1826 = vmatmul.mubr.msk.f32.gmra.mxu1 %vm435_vm0, %v2480_v32  ;;  %v2692_v8 = vld [vmem:[%s3079_s4 + $0x28] sm:$0xff]  ;;  %v2701_v11 = vld [vmem:[%s3079_s4 + $0x10] sm:$0xff]  ;;  %v418_v18 = vld [vmem:[%s3080_s5] sm:$0x7] }
  0x36   : > { %708 = vmatprep.subr.mxu0 %v2486_v33  ;;  %1949 = vmatprep.mubr.msk.f32.mxu1 %vm435_vm0, %v408_v16  ;;  %3107 = vst [vmem:[#allocation13_spill] sm:$0xff] %v2692_v8  ;;  %3108 = vst [vmem:[#allocation14_spill] sm:$0xff] %v2701_v11  ;;  %v422_v16 = vsub.s32 0, %v421_v14  ;;  %v427_v40 = vrot.slane %v418_v18, %v426_v24 }
  0x37   : > { %709 = vmatpush1.msra.mxu0 %v2493_v34  ;;  %864 = vperm.xlu0 %2161, %v862_v55  }
  0x38   : > { %710 = vmatprep.subr.mxu0 %v2500_v35 }
  0x39   : > { %711 = vmatpush1.msra.mxu0 %v2508_v36  ;;  %1950 = vmatmul.mubr.msk.f32.vlgmr.msra.gmra.mxu1 %vm435_vm0, %v409_v21 }
  0x3a   : > { %712 = vmatprep.subr.mxu0 %v2515_v37  ;;  %1956 = vmatpush3.msra.mxu1 %v2520_v38 }
  0x3b   : > { %713 = vmatpush1.msra.mxu0 %v2530_v41  ;;  %1957 = vmatprep.subr.mxu1 %v3090_v5 }
  0x3c   : > { %714 = vmatprep.subr.mxu0 %v2536_v42  ;;  %1958 = vmatpush3.msra.mxu1 %v2542_v43 }
  0x3d   : > { %715 = vmatpush1.msra.mxu0 %v2548_v44  ;;  %1959 = vmatprep.subr.mxu1 %v3090_v5 }
  0x3e   : > { %716 = vmatprep.subr.mxu0 %v2557_v46  ;;  %1960 = vmatpush3.msra.mxu1 %v2563_v47 }
  0x3f   : > { %717 = vmatpush1.msra.mxu0 %v2569_v48  ;;  %1961 = vmatprep.subr.mxu1 %v3090_v5 }
  0x40   : > { %718 = vmatprep.subr.mxu0 %v2576_v49  ;;  %1962 = vmatpush3.msra.mxu1 %v2582_v50 }
  0x41   : > { %719 = vmatpush1.msra.mxu0 %v2588_v51  ;;  %1963 = vmatprep.subr.mxu1 %v3090_v5 }
  0x42   : > { %753 = vmatmul.mubr.f32.vlgmr.msra.gmra.mxu0 %v2593_v52  ;;  %1964 = vmatpush3.msra.mxu1 %v2599_v53 }
  0x43   : > { %1965 = vmatprep.subr.mxu1 %v3090_v5  ;;  %1952 = vmatprep.mubr.msk.f32.mxu1 %vm435_vm0, %v2450_v27 }
  0x44   : > { %1966 = vmatpush3.msra.mxu1 %v2608_v54  ;;  %919 = vmatprep.subr.mxu0 %v2332_v1 }
  0x45   : > { %1967 = vmatprep.subr.mxu1 %v3090_v5  ;;  %1953 = vmatmul.mubr.msk.f32.gmra.mxu1 %vm435_vm0, %v2480_v32  ;;  %v423_v32 = vrot.slane %v418_v18, %v422_v16 }
  0x46   : > { %1968 = vmatpush3.msra.mxu1 %v2618_v56  ;;  %1987 = vmatprep.mubr.msk.f32.mxu1 %vm2230_vm3, %v3090_v5 }
  0x47   : > { %1969 = vmatprep.subr.mxu1 %v3090_v5  ;;  %1089 = vperm.xlu0 %2161, %v1087_v58  }
  0x48   : > { %1970 = vmatpush3.msra.mxu1 %v2627_v57  ;;  %920 = vmatpush1.msra.mxu0 %v2337_v2 }
  0x49   : > { %1971 = vmatprep.subr.mxu1 %v3090_v5  ;;  %921 = vmatprep.subr.mxu0 %v2342_v3 }
  0x4a   : > { %1972 = vmatpush3.msra.mxu1 %v2639_v59  ;;  %922 = vmatpush1.msra.mxu0 %v2348_v4 }
  0x4b   : > { %1973 = vmatprep.subr.mxu1 %v3090_v5  ;;  %923 = vmatprep.subr.mxu0 %v2355_v6 }
  0x4c   : > { %1974 = vmatpush3.msra.mxu1 %v2647_v60  ;;  %924 = vmatpush1.msra.mxu0 %v2362_v7 }
  0x4d   : > { %1975 = vmatprep.subr.mxu1 %v3090_v5  ;;  %925 = vmatprep.subr.mxu0 %v2372_v10 }
  0x4e   : > { %1976 = vmatpush3.msra.mxu1 %v2656_v61  ;;  %926 = vmatpush1.msra.mxu0 %v2381_v12 }
  0x4f   : > { %1977 = vmatprep.subr.mxu1 %v3090_v5  ;;  %927 = vmatprep.subr.mxu0 %v2393_v15 }
  0x50   : > { %1978 = vmatpush3.msra.mxu1 %v2665_v62  ;;  %928 = vmatpush1.msra.mxu0 %v2400_v17 }
  0x51   : > { %1979 = vmatprep.subr.mxu1 %v3090_v5  ;;  %929 = vmatprep.subr.mxu0 %v2409_v19 }
  0x52   : > { %1980 = vmatpush3.msra.mxu1 %v2674_v63  ;;  %930 = vmatpush1.msra.mxu0 %v2416_v20 }
  0x53   : > { %1981 = vmatprep.subr.mxu1 %v3090_v5  ;;  %931 = vmatprep.subr.mxu0 %v2423_v22 }
  0x54   : > { %1982 = vmatpush3.msra.mxu1 %v2683_v0  ;;  %932 = vmatpush1.msra.mxu0 %v2429_v23 }
  0x55   : > { %1983 = vmatprep.subr.mxu1 %v3090_v5  ;;  %933 = vmatprep.subr.mxu0 %v2439_v25 }
  0x56   : > { %1984 = vmatpush3.msra.mxu1 %v2692_v8  ;;  %934 = vmatpush1.msra.mxu0 %v2446_v26 }
  0x57   : > { %1985 = vmatprep.subr.mxu1 %v3090_v5  ;;  %935 = vmatprep.subr.mxu0 %v2456_v28 }
  0x58   : > { %1986 = vmatpush3.msra.mxu1 %v2701_v11  ;;  %936 = vmatpush1.msra.mxu0 %v2462_v29 }
  0x59   : > { %1988 = vmatmul.mubr.f32.vlgmr.msra.gmra.mxu1 %v2593_v52  ;;  %1990 = vmatprep.subr.mxu1 %v3090_v5 }
  0x5a   : > { %1991 = vmatpush3.msra.mxu1 %v2520_v38  ;;  %937 = vmatprep.subr.mxu0 %v2468_v30 }
  0x5b   : > { %1992 = vmatprep.subr.mxu1 %v3090_v5  ;;  %938 = vmatpush1.msra.mxu0 %v2476_v31 }
  0x5c   : > { %1993 = vmatpush3.msra.mxu1 %v2542_v43  ;;  %939 = vmatprep.subr.mxu0 %v2486_v33 }
  0x5d   : > { %1994 = vmatprep.subr.mxu1 %v3090_v5  ;;  %940 = vmatpush1.msra.mxu0 %v2493_v34 }
  0x5e   : > { %1995 = vmatpush3.msra.mxu1 %v2563_v47  ;;  %941 = vmatprep.subr.mxu0 %v2500_v35 }
  0x5f   : > { %1996 = vmatprep.subr.mxu1 %v3090_v5  ;;  %942 = vmatpush1.msra.mxu0 %v2508_v36 }
  0x60   : > { %1997 = vmatpush3.msra.mxu1 %v2582_v50  ;;  %943 = vmatprep.subr.mxu0 %v2515_v37 }
  0x61   : > { %1998 = vmatprep.subr.mxu1 %v3090_v5  ;;  %944 = vmatpush1.msra.mxu0 %v2530_v41 }
  0x62   : > { %1999 = vmatpush3.msra.mxu1 %v2599_v53  ;;  %945 = vmatprep.subr.mxu0 %v2536_v42 }
  0x63   : > { %2000 = vmatprep.subr.mxu1 %v3090_v5  ;;  %946 = vmatpush1.msra.mxu0 %v2548_v44 }
  0x64   : > { %2001 = vmatpush3.msra.mxu1 %v2608_v54  ;;  %947 = vmatprep.subr.mxu0 %v2557_v46 }
  0x65   : > { %2002 = vmatprep.subr.mxu1 %v3090_v5  ;;  %948 = vmatpush1.msra.mxu0 %v2569_v48 }
  0x66   : > { %2003 = vmatpush3.msra.mxu1 %v2618_v56  ;;  %949 = vmatprep.subr.mxu0 %v2576_v49 }
  0x67   : > { %2004 = vmatprep.subr.mxu1 %v3090_v5  ;;  %950 = vmatpush1.msra.mxu0 %v2588_v51 }
  0x68   : > { %2005 = vmatpush3.msra.mxu1 %v2627_v57  ;;  %983 = vmatprep.mubr.f32.mxu0 %v3090_v5 }
  0x69   : > { %2006 = vmatprep.subr.mxu1 %v3090_v5  ;;  %2022 = vmatprep.mubr.msk.f32.mxu1 %vm2230_vm3, %v3090_v5 }
  0x6a   : > { %2007 = vmatpush3.msra.mxu1 %v2639_v59  ;;  %1145 = vmatprep.subr.mxu0 %v2332_v1 }
  0x6b   : > { %2008 = vmatprep.subr.mxu1 %v3090_v5 }
  0x6c   : > { %2009 = vmatpush3.msra.mxu1 %v2647_v60 }
  0x6d   : > { %2010 = vmatprep.subr.mxu1 %v3090_v5 }
  0x6e   : > { %2011 = vmatpush3.msra.mxu1 %v2656_v61 }
  0x6f   : > { %2012 = vmatprep.subr.mxu1 %v3090_v5 }
  0x70   : > { %2013 = vmatpush3.msra.mxu1 %v2665_v62 }
  0x71   : > { %2014 = vmatprep.subr.mxu1 %v3090_v5 }
  0x72   : > { %2015 = vmatpush3.msra.mxu1 %v2674_v63 }
  0x73   : > { %2016 = vmatprep.subr.mxu1 %v3090_v5 }
  0x74   : > { %2017 = vmatpush3.msra.mxu1 %v2683_v0 }
  0x75   : > { %2018 = vmatprep.subr.mxu1 %v3090_v5 }
  0x76   : > { %2019 = vmatpush3.msra.mxu1 %v2692_v8  ;;  %v431_v8 = vrot.slane %v418_v18, %v430_v13 }
  0x77   : > { %2020 = vmatprep.subr.mxu1 %v3090_v5 }
  0x78   : > { %2021 = vmatpush3.msra.mxu1 %v2701_v11 }
  0x79   : > { %2025 = vmatprep.subr.mxu1 %v3090_v5 }
  0xe9   : > { %v514_v21 = vpop.f32.mrf.mxu1 }
  0xeb   : > { %v516_v27 = vpop.f32.mrf.mxu1 }
  0xec   : > { %v517_v18 = vadd.f32 %v516_v27, %v427_v40 }
  0xed   : > { %v520_v39 = vpop.f32.mrf.mxu1 }
  0xee   : > { %v2766_v55 = vadd.f32 %v520_v39, %v423_v32 }
  0xef   : > { %v522_v58 = vpop.f32.mrf.mxu1 }
  0xf0   : > { %3109 = vst [vmem:[#allocation15_spill] sm:$0xff] %v2766_v55  ;;  %v2768_v9 = vadd.f32 %v522_v58, %v427_v40  ;;  %v515_v55 = vadd.f32 %v514_v21, %v423_v32 }
  0xf1   : > { %v526_v45 = vpop.f32.mrf.mxu1 }
  0xf2   : > { %3110 = vst [vmem:[#allocation16_spill] sm:$0xff] %v2768_v9  ;;  %v2770_v5 = vadd.f32 %v526_v45, %v423_v32 }
  0xf3   : > { %v528_v1 = vpop.f32.mrf.mxu1 }
  0xf4   : > { %3111 = vst [vmem:[#allocation17_spill] sm:$0xff] %v2770_v5  ;;  %v2772_v11 = vadd.f32 %v528_v1, %v427_v40 }
  0xf5   : > { %v532_v51 = vpop.f32.mrf.mxu1 }
  0xf6   : > { %3112 = vst [vmem:[#allocation18_spill] sm:$0xff] %v2772_v11  ;;  %v2774_v49 = vadd.f32 %v532_v51, %v423_v32 }
  0xf7   : > { %v534_v48 = vpop.f32.mrf.mxu1 }
  0xf8   : > { %3113 = vst [vmem:[#allocation19_spill] sm:$0xff] %v2774_v49  ;;  %v2776_v16 = vadd.f32 %v534_v48, %v427_v40 }
  0xf9   : > { %v1951_v24 = vpop.f32.mrf.mxu1 }
  0xfa   : > { %3114 = vst [vmem:[#allocation20_spill] sm:$0xff] %v2776_v16  ;;  %v2778_v39 = vadd.f32 %v1951_v24, %v431_v8 }
  0xfb   : > { %v603_v46 = vpop.f32.mrf.mxu1 }
 0x102   : > { %v754_v58 = vpop.f32.mrf.mxu0 }
 0x103   : > { %v833_v9 = vadd.f32 %v754_v58, %v515_v55  ;;  %v604_v58 = vadd.f32 %v603_v46, %v431_v8 }
 0x104   : > { %v756_v51 = vpop.f32.mrf.mxu0 }
 0x105   : > { %v1831_v45 = vmul.f32 -1.442695, %v833_v9  ;;  %v1954_v5 = vpop.f32.mrf.mxu1  ;;  %v841_v13 = vadd.f32 %v756_v51, %v517_v18  ;;  %v2787_v9 = vld [vmem:[%s3081_s6] ss:$0 sm:$0xff]  ;;  %v2791_v51 = vpop.permute.xlu0 %864 }
 0x106   : > { %v2780_v14 = vadd.f32 %v1954_v5, %v431_v8  ;;  %vm866_vm4 = vcmp.eq.s32.totalorder %v2791_v51, 1  ;;  %v1561_v51 = vld [vmem:[%s3082_s7 + $0x40] sm:$0xff] }
 0x107   : > { %2163 = vpow2.f32 %v1831_v45  ;;  %v613_v1 = vpop.f32.mrf.mxu1  ;;  %v1832_v48 = vmul.f32 -1.442695, %v841_v13 }
 0x108   : > { %3115 = vst [vmem:[#allocation21_spill] sm:$0xff] %v2780_v14  ;;  %v2782_v11 = vadd.f32 %v613_v1, %v431_v8  ;;  %v3116_v8 = vmov 0.0  }
 0x109   : > { %2165 = vpow2.f32 %v1832_v48  ;;  %v3120_v48 = vld [vmem:[#allocation11_spill] sm:$0xff] }
 0x114   : > { %v2164_v16 = vpop.eup %2163 }
 0x115   : > { %v837_v49 = vadd.f32 1.0, %v2164_v16 }
 0x116   : > { %v2166_v55 = vpop.eup %2165 }
 0x117   : > { %2167 = vrcp.f32 %v837_v49  ;;  %v845_v27 = vadd.f32 1.0, %v2166_v55 }
 0x119   : > { %v825_v21 = vpop.f32.mrf.mxu1 }
 0x11a   : > { %v855_v5 = vadd.f32 %v2787_v9, %v825_v21  ;;  %v3121_v21 = vld [vmem:[#allocation12_spill] sm:$0xff] }
 0x11b   : > { %v1989_v32 = vpop.f32.mrf.mxu1 }
 0x11c   : > { %v3124_v32 = vld [vmem:[#allocation8_spill] sm:$0xff] }
 0x11d   : > { %vm1096_vm5 = vcmp.gt.s32.totalorder %v3124_v32, 2  ;;  %vm1322_vm6 = vcmp.gt.s32.totalorder %v3124_v32, 3 }
 0x124   : > { %v2168_v24 = vpop.eup %2167 }
 0x125   : > { %v856_v45 = vmul.f32 %v2168_v24, %v855_v5  ;;  %v3125_v5 = vmov 0  }
 0x126   : > { %v1313_v55 = vsel %vm1096_vm5, 1, %v3125_v5  ;;  %v1539_v24 = vsel %vm1322_vm6, 1, %v3125_v5 }
 0x127   : > { %v857_v40 = vadd.f32 %v856_v45, %v604_v58  ;;  %1315 = vperm.xlu1 %2162, %v1313_v55  }
 0x129   : > { %2169 = vtanh.f32 %v857_v40 }
 0x12a   : > { %2171 = vrcp.f32 %v845_v27  ;;  %v3126_v27 = vld [vmem:[#allocation15_spill] sm:$0xff] }
 0x12b   : > { %1541 = vperm.xlu1 %2162, %v1539_v24  }
 0x136   : > { %v2170_v16 = vpop.eup %2169 }
 0x137   : > { %v859_v49 = vsub.f32 %v2593_v52, %v2170_v16  ;;  %v2172_v1 = vpop.eup %2171 }
 0x139   : > { %v860_v18 = vmul.f32 %v2172_v1, %v859_v49 }
 0x13b   : > { %v2794_v13 = vadd.f32 %v2170_v16, %v860_v18  ;;  %v3127_v18 = vld [vmem:[#allocation16_spill] sm:$0xff] }
 0x13d   : > { %v2800_v46 = vsel %vm866_vm4, %v2794_v13, %v2593_v52  ;;  %v3119_v52 = vld [vmem:[#allocation13_spill] sm:$0xff] }
 0x13e   : > { %984 = vmatmul.mubr.f32.vlgmr.msra.gmra.mxu0 %v2800_v46  ;;  %2023 = vmatmul.mubr.f32.vlgmr.msra.gmra.mxu1 %v2800_v46 }
 0x13f   : > { %1146 = vmatpush1.msra.mxu0 %v2337_v2  ;;  %2026 = vmatpush3.msra.mxu1 %v2520_v38 }
 0x140   : > { %1147 = vmatprep.subr.mxu0 %v2342_v3  ;;  %2027 = vmatprep.subr.mxu1 %v3116_v8 }
 0x141   : > { %1148 = vmatpush1.msra.mxu0 %v2348_v4  ;;  %2028 = vmatpush3.msra.mxu1 %v2542_v43 }
 0x142   : > { %1149 = vmatprep.subr.mxu0 %v2355_v6  ;;  %2029 = vmatprep.subr.mxu1 %v3116_v8 }
 0x143   : > { %1150 = vmatpush1.msra.mxu0 %v2362_v7  ;;  %2030 = vmatpush3.msra.mxu1 %v2563_v47 }
 0x144   : > { %1151 = vmatprep.subr.mxu0 %v2372_v10  ;;  %2031 = vmatprep.subr.mxu1 %v3116_v8 }
 0x145   : > { %1152 = vmatpush1.msra.mxu0 %v2381_v12  ;;  %2032 = vmatpush3.msra.mxu1 %v2582_v50 }
 0x146   : > { %1153 = vmatprep.subr.mxu0 %v2393_v15  ;;  %2033 = vmatprep.subr.mxu1 %v3116_v8 }
 0x147   : > { %1154 = vmatpush1.msra.mxu0 %v2400_v17  ;;  %2034 = vmatpush3.msra.mxu1 %v2599_v53 }
 0x148   : > { %1155 = vmatprep.subr.mxu0 %v2409_v19  ;;  %2035 = vmatprep.subr.mxu1 %v3116_v8  ;;  %v3117_v19 = vld [vmem:[#allocation9_spill] sm:$0xff] }
 0x149   : > { %1156 = vmatpush1.msra.mxu0 %v2416_v20  ;;  %2036 = vmatpush3.msra.mxu1 %v2608_v54  ;;  %v3118_v20 = vld [vmem:[#allocation10_spill] sm:$0xff] }
 0x14a   : > { %1157 = vmatprep.subr.mxu0 %v2423_v22  ;;  %2037 = vmatprep.subr.mxu1 %v3116_v8 }
 0x14b   : > { %1158 = vmatpush1.msra.mxu0 %v2429_v23  ;;  %2038 = vmatpush3.msra.mxu1 %v2618_v56 }
 0x14c   : > { %1159 = vmatprep.subr.mxu0 %v2439_v25  ;;  %2039 = vmatprep.subr.mxu1 %v3116_v8 }
 0x14d   : > { %1160 = vmatpush1.msra.mxu0 %v2446_v26  ;;  %2040 = vmatpush3.msra.mxu1 %v2627_v57 }
 0x14e   : > { %1161 = vmatprep.subr.mxu0 %v2456_v28  ;;  %2041 = vmatprep.subr.mxu1 %v3116_v8 }
 0x14f   : > { %1162 = vmatpush1.msra.mxu0 %v2462_v29  ;;  %2042 = vmatpush3.msra.mxu1 %v2639_v59 }
 0x150   : > { %1163 = vmatprep.subr.mxu0 %v2468_v30  ;;  %2043 = vmatprep.subr.mxu1 %v3116_v8 }
 0x151   : > { %1164 = vmatpush1.msra.mxu0 %v2476_v31  ;;  %2044 = vmatpush3.msra.mxu1 %v2647_v60 }
 0x152   : > { %1165 = vmatprep.subr.mxu0 %v2486_v33  ;;  %2045 = vmatprep.subr.mxu1 %v3116_v8 }
 0x153   : > { %1166 = vmatpush1.msra.mxu0 %v2493_v34  ;;  %2046 = vmatpush3.msra.mxu1 %v2656_v61 }
 0x154   : > { %1167 = vmatprep.subr.mxu0 %v2500_v35  ;;  %2047 = vmatprep.subr.mxu1 %v3116_v8 }
 0x155   : > { %1168 = vmatpush1.msra.mxu0 %v2508_v36  ;;  %2048 = vmatpush3.msra.mxu1 %v2665_v62 }
 0x156   : > { %1169 = vmatprep.subr.mxu0 %v2515_v37  ;;  %2049 = vmatprep.subr.mxu1 %v3116_v8 }
 0x157   : > { %1170 = vmatpush1.msra.mxu0 %v2530_v41  ;;  %2050 = vmatpush3.msra.mxu1 %v2674_v63 }
 0x158   : > { %1171 = vmatprep.subr.mxu0 %v2536_v42  ;;  %2051 = vmatprep.subr.mxu1 %v3116_v8  ;;  %v3122_v42 = vld [vmem:[#allocation14_spill] sm:$0xff] }
 0x159   : > { %1172 = vmatpush1.msra.mxu0 %v2548_v44  ;;  %2052 = vmatpush3.msra.mxu1 %v2683_v0  ;;  %v3123_v44 = vld [vmem:[#allocation7_spill] sm:$0xff] }
 0x15a   : > { %1173 = vmatprep.subr.mxu0 %v3117_v19  ;;  %2053 = vmatprep.subr.mxu1 %v3116_v8 }
 0x15b   : > { %1174 = vmatpush1.msra.mxu0 %v3118_v20  ;;  %2054 = vmatpush3.msra.mxu1 %v3119_v52 }
 0x15c   : > { %1175 = vmatprep.subr.mxu0 %v3120_v48  ;;  %2055 = vmatprep.subr.mxu1 %v3116_v8 }
 0x15d   : > { %1176 = vmatpush1.msra.mxu0 %v3121_v21  ;;  %1209 = vmatprep.mubr.f32.mxu0 %v3116_v8 }
 0x15e   : > { %2056 = vmatpush3.msra.mxu1 %v3122_v42  ;;  %2057 = vmatprep.mubr.msk.f32.mxu1 %vm2230_vm3, %v3116_v8 }
 0x15f   : > { %1371 = vmatprep.subr.mxu0 %v3123_v44  ;;  %2060 = vmatprep.subr.mxu1 %v3116_v8 }
 0x1fe   : > { %v985_v58 = vpop.f32.mrf.mxu0  ;;  %v1056_v45 = vpop.f32.mrf.mxu1 }
 0x1ff   : > { %v1064_v40 = vadd.f32 %v985_v58, %v3126_v27  ;;  %v1080_v32 = vadd.f32 %v2787_v9, %v1056_v45 }
 0x200   : > { %v2024_v16 = vpop.f32.mrf.mxu1  ;;  %v987_v1 = vpop.f32.mrf.mxu0 }
 0x201   : > { %v1834_v49 = vmul.f32 -1.442695, %v1064_v40  ;;  %v1072_v19 = vadd.f32 %v987_v1, %v3127_v18  ;;  %v2880_v16 = vpop.permute.xlu0 %1089  ;;  %v1555_v18 = vld [vmem:[%s3082_s7 + $0x10] sm:$0xff] }
 0x202   : > { %vm1091_vm7 = vcmp.eq.s32.totalorder %v2880_v16, 1 }
 0x203   : > { %2173 = vpow2.f32 %v1834_v49  ;;  %v1835_v20 = vmul.f32 -1.442695, %v1072_v19  ;;  %v1554_v19 = vld [vmem:[%s3082_s7 + $0x8] sm:$0xff] }
 0x205   : > { %2175 = vpow2.f32 %v1835_v20  ;;  %v1553_v20 = vld [vmem:[%s3082_s7] sm:$0xff] }
 0x210   : > { %v2174_v48 = vpop.eup %2173 }
 0x211   : > { %v1068_v21 = vadd.f32 1.0, %v2174_v48 }
 0x212   : > { %v2176_v44 = vpop.eup %2175 }
 0x213   : > { %2177 = vrcp.f32 %v1068_v21  ;;  %v1076_v14 = vadd.f32 1.0, %v2176_v44  ;;  %v3130_v44 = vld [vmem:[#allocation19_spill] sm:$0xff] }
 0x220   : > { %v2178_v5 = vpop.eup %2177 }
 0x221   : > { %v1081_v55 = vmul.f32 %v2178_v5, %v1080_v32 }
 0x223   : > { %v1082_v24 = vadd.f32 %v1081_v55, %v2778_v39  ;;  %v1563_v39 = vld [vmem:[%s3082_s7 + $0x50] sm:$0xff] }
 0x225   : > { %2179 = vtanh.f32 %v1082_v24 }
 0x226   : > { %2181 = vrcp.f32 %v1076_v14  ;;  %v1562_v14 = vld [vmem:[%s3082_s7 + $0x48] sm:$0xff] }
 0x232   : > { %v2180_v58 = vpop.eup %2179 }
 0x233   : > { %v1084_v27 = vsub.f32 %v2800_v46, %v2180_v58  ;;  %v2182_v40 = vpop.eup %2181 }
 0x235   : > { %v1085_v49 = vmul.f32 %v2182_v40, %v1084_v27 }
 0x237   : > { %v2882_v1 = vadd.f32 %v2180_v58, %v1085_v49  ;;  %v3131_v58 = vld [vmem:[#allocation20_spill] sm:$0xff] }
 0x239   : > { %v2889_v45 = vsel %vm1091_vm7, %v2882_v1, %v2800_v46  ;;  %v1559_v46 = vld [vmem:[%s3082_s7 + $0x30] sm:$0xff] }
 0x23a   : > { %1210 = vmatmul.mubr.f32.vlgmr.msra.gmra.mxu0 %v2889_v45  ;;  %2058 = vmatmul.mubr.f32.vlgmr.msra.gmra.mxu1 %v2889_v45 }
 0x23b   : > { %1372 = vmatpush1.msra.mxu0 %v2337_v2  ;;  %2061 = vmatpush3.msra.mxu1 %v2520_v38  ;;  %v1354_v2 = vld [vmem:[%s3079_s4 + $0xf8] sm:$0xff] }
 0x23c   : > { %1373 = vmatprep.subr.mxu0 %v2342_v3  ;;  %2062 = vmatprep.subr.mxu1 %v3116_v8  ;;  %v1353_v3 = vld [vmem:[%s3079_s4 + $0xf0] sm:$0xff] }
 0x23d   : > { %1374 = vmatpush1.msra.mxu0 %v2348_v4  ;;  %2063 = vmatpush3.msra.mxu1 %v2542_v43  ;;  %v1330_v4 = vld [vmem:[%s3079_s4 + $0x38] sm:$0xff] }
 0x23e   : > { %1375 = vmatprep.subr.mxu0 %v2355_v6  ;;  %2064 = vmatprep.subr.mxu1 %v3116_v8  ;;  %v1329_v6 = vld [vmem:[%s3079_s4 + $0x30] sm:$0xff] }
 0x23f   : > { %1376 = vmatpush1.msra.mxu0 %v2362_v7  ;;  %2065 = vmatpush3.msra.mxu1 %v2563_v47  ;;  %v1327_v7 = vld [vmem:[%s3079_s4 + $0x20] sm:$0xff] }
 0x240   : > { %1377 = vmatprep.subr.mxu0 %v2372_v10  ;;  %2066 = vmatprep.subr.mxu1 %v3116_v8  ;;  %v1326_v10 = vld [vmem:[%s3079_s4 + $0x18] sm:$0xff] }
 0x241   : > { %1378 = vmatpush1.msra.mxu0 %v2381_v12  ;;  %2067 = vmatpush3.msra.mxu1 %v2582_v50  ;;  %v1324_v12 = vld [vmem:[%s3079_s4 + $0x8] sm:$0xff] }
 0x242   : > { %1379 = vmatprep.subr.mxu0 %v2393_v15  ;;  %2068 = vmatprep.subr.mxu1 %v3116_v8  ;;  %v1323_v15 = vld [vmem:[%s3079_s4] sm:$0xff] }
 0x243   : > { %1380 = vmatpush1.msra.mxu0 %v2400_v17  ;;  %2069 = vmatpush3.msra.mxu1 %v2599_v53  ;;  %v1568_v17 = vld [vmem:[%s3082_s7 + $0x78] sm:$0xff] }
 0x244   : > { %2070 = vmatprep.subr.mxu1 %v3116_v8  ;;  %1435 = vmatprep.mubr.f32.mxu0 %v3116_v8 }
 0x245   : > { %2071 = vmatpush3.msra.mxu1 %v2608_v54  ;;  %2092 = vmatprep.mubr.msk.f32.mxu1 %vm2230_vm3, %v3116_v8 }
 0x246   : > { %2072 = vmatprep.subr.mxu1 %v3116_v8  ;;  %1381 = vmatprep.subr.mxu0 %v1354_v2 }
 0x247   : > { %2073 = vmatpush3.msra.mxu1 %v2618_v56  ;;  %1382 = vmatpush1.msra.mxu0 %v1353_v3  ;;  %v1840_v3 = vld [vmem:[%s3083_s8] ss:$0 sm:$0xff] }
 0x248   : > { %2074 = vmatprep.subr.mxu1 %v3116_v8  ;;  %1383 = vmatprep.subr.mxu0 %v2423_v22 }
 0x249   : > { %2075 = vmatpush3.msra.mxu1 %v2627_v57  ;;  %1384 = vmatpush1.msra.mxu0 %v2429_v23  ;;  %v1316_v57 = vpop.permute.xlu1 %1315 }
 0x24a   : > { %2076 = vmatprep.subr.mxu1 %v3116_v8  ;;  %1385 = vmatprep.subr.mxu0 %v2439_v25  ;;  %v3128_v25 = vld [vmem:[#allocation17_spill] sm:$0xff]  ;;  %vm1317_vm8 = vcmp.eq.s32.totalorder %v1316_v57, 1 }
 0x24b   : > { %2077 = vmatpush3.msra.mxu1 %v2639_v59  ;;  %1386 = vmatpush1.msra.mxu0 %v2446_v26 }
 0x24c   : > { %2078 = vmatprep.subr.mxu1 %v3116_v8  ;;  %1387 = vmatprep.subr.mxu0 %v2456_v28 }
 0x24d   : > { %2079 = vmatpush3.msra.mxu1 %v2647_v60  ;;  %1388 = vmatpush1.msra.mxu0 %v2462_v29 }
 0x24e   : > { %2080 = vmatprep.subr.mxu1 %v3116_v8  ;;  %1389 = vmatprep.subr.mxu0 %v2468_v30 }
 0x24f   : > { %2081 = vmatpush3.msra.mxu1 %v2656_v61  ;;  %1390 = vmatpush1.msra.mxu0 %v2476_v31  ;;  %v3129_v31 = vld [vmem:[#allocation18_spill] sm:$0xff] }
 0x250   : > { %2082 = vmatprep.subr.mxu1 %v3116_v8  ;;  %1391 = vmatprep.subr.mxu0 %v2486_v33 }
 0x251   : > { %2083 = vmatpush3.msra.mxu1 %v2665_v62  ;;  %1392 = vmatpush1.msra.mxu0 %v2493_v34  ;;  %v1567_v62 = vld [vmem:[%s3082_s7 + $0x70] sm:$0xff] }
 0x252   : > { %2084 = vmatprep.subr.mxu1 %v3116_v8  ;;  %1393 = vmatprep.subr.mxu0 %v2500_v35 }
 0x253   : > { %2085 = vmatpush3.msra.mxu1 %v2674_v63  ;;  %1394 = vmatpush1.msra.mxu0 %v2508_v36  ;;  %v1566_v63 = vld [vmem:[%s3082_s7 + $0x68] sm:$0xff] }
 0x254   : > { %2086 = vmatprep.subr.mxu1 %v3116_v8  ;;  %1395 = vmatprep.subr.mxu0 %v2515_v37 }
 0x255   : > { %2087 = vmatpush3.msra.mxu1 %v2683_v0  ;;  %1396 = vmatpush1.msra.mxu0 %v2530_v41  ;;  %v1565_v0 = vld [vmem:[%s3082_s7 + $0x60] sm:$0xff] }
 0x256   : > { %2088 = vmatprep.subr.mxu1 %v3116_v8  ;;  %1397 = vmatprep.subr.mxu0 %v1330_v4 }
 0x257   : > { %2089 = vmatpush3.msra.mxu1 %v3119_v52  ;;  %1398 = vmatpush1.msra.mxu0 %v1329_v6  ;;  %v1557_v52 = vld [vmem:[%s3082_s7 + $0x20] sm:$0xff] }
 0x258   : > { %2090 = vmatprep.subr.mxu1 %v3116_v8  ;;  %1399 = vmatprep.subr.mxu0 %v1327_v7  ;;  %v1558_v8 = vld [vmem:[%s3082_s7 + $0x28] sm:$0xff] }
 0x259   : > { %2091 = vmatpush3.msra.mxu1 %v3122_v42  ;;  %1400 = vmatpush1.msra.mxu0 %v1326_v10  ;;  %v1556_v42 = vld [vmem:[%s3082_s7 + $0x18] sm:$0xff] }
 0x25a   : > { %1401 = vmatprep.subr.mxu0 %v1324_v12 }
 0x25b   : > { %1402 = vmatpush1.msra.mxu0 %v1323_v15  ;;  %v3132_v15 = vld [vmem:[#allocation21_spill] sm:$0xff] }
 0x25c   : > { %2095 = vmatprep.subr.mxu0 %v1568_v17 }
 0x2fa   : > { %v1211_v22 = vpop.f32.mrf.mxu0  ;;  %v1282_v23 = vpop.f32.mrf.mxu1 }
 0x2fb   : > { %v1290_v26 = vadd.f32 %v1211_v22, %v3128_v25  ;;  %v1306_v38 = vadd.f32 %v2787_v9, %v1282_v23 }
 0x2fc   : > { %v2059_v28 = vpop.f32.mrf.mxu1  ;;  %v1213_v30 = vpop.f32.mrf.mxu0 }
 0x2fd   : > { %v1836_v29 = vmul.f32 -1.442695, %v1290_v26  ;;  %v1298_v33 = vadd.f32 %v1213_v30, %v3129_v31  ;;  %v1542_v26 = vpop.permute.xlu1 %1541 }
 0x2fe   : > { %vm1543_vm9 = vcmp.eq.s32.totalorder %v1542_v26, 1 }
 0x2ff   : > { %2183 = vpow2.f32 %v1836_v29  ;;  %v1837_v34 = vmul.f32 -1.442695, %v1298_v33 }
 0x301   : > { %2185 = vpow2.f32 %v1837_v34 }
 0x30c   : > { %v2184_v35 = vpop.eup %2183 }
 0x30d   : > { %v1294_v36 = vadd.f32 1.0, %v2184_v35 }
 0x30e   : > { %v2186_v37 = vpop.eup %2185 }
 0x30f   : > { %2187 = vrcp.f32 %v1294_v36  ;;  %v1302_v50 = vadd.f32 1.0, %v2186_v37 }
 0x31c   : > { %v2188_v41 = vpop.eup %2187 }
 0x31d   : > { %v1307_v43 = vmul.f32 %v2188_v41, %v1306_v38 }
 0x31f   : > { %v1308_v47 = vadd.f32 %v1307_v43, %v2782_v11  ;;  %v1564_v11 = vld [vmem:[%s3082_s7 + $0x58] sm:$0xff] }
 0x321   : > { %2189 = vtanh.f32 %v1308_v47 }
 0x322   : > { %2191 = vrcp.f32 %v1302_v50 }
 0x32e   : > { %v2190_v53 = vpop.eup %2189 }
 0x32f   : > { %v1310_v54 = vsub.f32 %v2889_v45, %v2190_v53  ;;  %v2192_v56 = vpop.eup %2191 }
 0x331   : > { %v1311_v59 = vmul.f32 %v2192_v56, %v1310_v54 }
 0x333   : > { %v1312_v60 = vadd.f32 %v2190_v53, %v1311_v59 }
 0x335   : > { %v2984_v61 = vsel %vm1317_vm8, %v1312_v60, %v2889_v45 }
 0x336   : > { %1436 = vmatmul.mubr.f32.vlgmr.msra.gmra.mxu0 %v2984_v61  ;;  %2093 = vmatmul.mubr.f32.vlgmr.msra.gmra.mxu1 %v2984_v61 }
 0x337   : > { %2096 = vmatpush3.msra.mxu0 %v1568_v17  ;;  %2127 = vmatprep.mubr.msk.f32.mxu0 %vm866_vm4, %v2794_v13  ;;  %v1560_v13 = vld [vmem:[%s3082_s7 + $0x38] sm:$0xff] }
 0x338   : > { %2097 = vmatprep.subr.mxu0 %v1567_v62 }
 0x339   : > { %2098 = vmatpush3.msra.mxu0 %v1567_v62 }
 0x33a   : > { %2099 = vmatprep.subr.mxu0 %v1566_v63 }
 0x33b   : > { %2100 = vmatpush3.msra.mxu0 %v1566_v63 }
 0x33c   : > { %2101 = vmatprep.subr.mxu0 %v1565_v0 }
 0x33d   : > { %2102 = vmatpush3.msra.mxu0 %v1565_v0 }
 0x33e   : > { %2103 = vmatprep.subr.mxu0 %v1564_v11 }
 0x33f   : > { %2104 = vmatpush3.msra.mxu0 %v1564_v11 }
 0x340   : > { %2105 = vmatprep.subr.mxu0 %v1563_v39 }
 0x341   : > { %2106 = vmatpush3.msra.mxu0 %v1563_v39 }
 0x342   : > { %2107 = vmatprep.subr.mxu0 %v1562_v14 }
 0x343   : > { %2108 = vmatpush3.msra.mxu0 %v1562_v14 }
 0x344   : > { %2109 = vmatprep.subr.mxu0 %v1561_v51 }
 0x345   : > { %2110 = vmatpush3.msra.mxu0 %v1561_v51 }
 0x346   : > { %2111 = vmatprep.subr.mxu0 %v1560_v13 }
 0x347   : > { %2112 = vmatpush3.msra.mxu0 %v1560_v13 }
 0x348   : > { %2113 = vmatprep.subr.mxu0 %v1559_v46 }
 0x349   : > { %2114 = vmatpush3.msra.mxu0 %v1559_v46 }
 0x34a   : > { %2115 = vmatprep.subr.mxu0 %v1558_v8 }
 0x34b   : > { %2116 = vmatpush3.msra.mxu0 %v1558_v8 }
 0x34c   : > { %2117 = vmatprep.subr.mxu0 %v1557_v52 }
 0x34d   : > { %2118 = vmatpush3.msra.mxu0 %v1557_v52 }
 0x34e   : > { %2119 = vmatprep.subr.mxu0 %v1556_v42 }
 0x34f   : > { %2120 = vmatpush3.msra.mxu0 %v1556_v42 }
 0x350   : > { %2121 = vmatprep.subr.mxu0 %v1555_v18 }
 0x351   : > { %2122 = vmatpush3.msra.mxu0 %v1555_v18 }
 0x352   : > { %2123 = vmatprep.subr.mxu0 %v1554_v19 }
 0x353   : > { %2124 = vmatpush3.msra.mxu0 %v1554_v19 }
 0x354   : > { %2125 = vmatprep.subr.mxu0 %v1553_v20 }
 0x355   : > { %2126 = vmatpush3.msra.mxu0 %v1553_v20 }
 0x356   : > { %2128 = vmatmul.mubr.msk.f32.vlgmr.msra.gmra.mxu0 %vm1091_vm7, %v2882_v1 }
 0x357   : > { %2130 = vmatprep.mubr.msk.f32.mxu0 %vm1317_vm8, %v1312_v60 }
 0x3f6   : > { %v1437_v48 = vpop.f32.mrf.mxu0  ;;  %v1508_v21 = vpop.f32.mrf.mxu1 }
 0x3f7   : > { %v1516_v32 = vadd.f32 %v1437_v48, %v3130_v44  ;;  %v1532_v2 = vadd.f32 %v2787_v9, %v1508_v21 }
 0x3f8   : > { %v2094_v5 = vpop.f32.mrf.mxu1  ;;  %v1439_v24 = vpop.f32.mrf.mxu0 }
 0x3f9   : > { %v1838_v55 = vmul.f32 -1.442695, %v1516_v32  ;;  %v1524_v27 = vadd.f32 %v1439_v24, %v3131_v58 }
 0x3fb   : > { %2193 = vpow2.f32 %v1838_v55  ;;  %v1839_v40 = vmul.f32 -1.442695, %v1524_v27 }
 0x3fd   : > { %2195 = vpow2.f32 %v1839_v40 }
 0x408   : > { %v2194_v49 = vpop.eup %2193 }
 0x409   : > { %v1520_v45 = vadd.f32 1.0, %v2194_v49 }
 0x40a   : > { %v2196_v1 = vpop.eup %2195 }
 0x40b   : > { %2197 = vrcp.f32 %v1520_v45  ;;  %v1528_v22 = vadd.f32 1.0, %v2196_v1 }
 0x416   : > { %v2129_v16 = vpop.f32.mrf.mxu0 }
 0x417   : > { %v1648_v12 = vadd.f32 %v2129_v16, %v1840_v3 }
 0x418   : > { %v2198_v4 = vpop.eup %2197  ;;  %v1642_v6 = vpop.f32.mrf.mxu0 }
 0x419   : > { %v1533_v7 = vmul.f32 %v2198_v4, %v1532_v2  ;;  %v1643_v10 = vadd.f32 %v1840_v3, %v1642_v6  ;;  %1662 = vst [vmem:[%s2322_s26 + $0x8] sm:$0xff] %v1648_v12 }
 0x41b   : > { %v1534_v17 = vadd.f32 %v1533_v7, %v3132_v15  ;;  %1661 = vst [vmem:[%s2322_s26] sm:$0xff] %v1643_v10 }
 0x41d   : > { %2199 = vtanh.f32 %v1534_v17 }
 0x41e   : > { %2201 = vrcp.f32 %v1528_v22 }
 0x42a   : > { %v2200_v23 = vpop.eup %2199 }
 0x42b   : > { %v1536_v9 = vsub.f32 %v2984_v61, %v2200_v23  ;;  %v2202_v25 = vpop.eup %2201 }
 0x42d   : > { %v1537_v28 = vmul.f32 %v2202_v25, %v1536_v9 }
 0x42f   : > { %v1538_v29 = vadd.f32 %v2200_v23, %v1537_v28 }
 0x431   : > { %v1547_v30 = vsel %vm1543_vm9, %v1538_v29, %v2984_v61  ;;  %2131 = vmatmul.mubr.msk.f32.gmra.mxu0 %vm1543_vm9, %v1538_v29 }
 0x432   : > { %1548 = vst [vmem:[#allocation2] sm:$0xff] %v1547_v30 }
 0x4f1   : > { %v2132_v31 = vpop.f32.mrf.mxu0 }
 0x4f2   : > { %v1658_v35 = vadd.f32 %v2132_v31, %v1840_v3 }
 0x4f3   : > { %v1652_v33 = vpop.f32.mrf.mxu0 }
 0x4f4   : > { %v1653_v34 = vadd.f32 %v1840_v3, %v1652_v33  ;;  %1664 = vst [vmem:[%s2322_s26 + $0x18] sm:$0xff] %v1658_v35 }
 0x4f6   : > { %1663 = vst [vmem:[%s2322_s26 + $0x10] sm:$0xff] %v1653_v34 }
 0x4f7 PF: > { %p1841_p7 = scmp.lt.s32.totalorder %s2310_s18, %s2325_s27 }
 0x4f9   : > { %1668 = sbr.rel (%p1841_p7) target bundleno = 1281 (0x501), region = 64 }
 0x4fe   : > { %v1842_v36 = vld [vmem:[%s3083_s8] ss:$0 sm:$0xff] }
 0x4ff   : > { %1676 = vst [vmem:[%s2322_s26] sm:$0xff] %v1842_v36  ;;  %1677 = vst [vmem:[%s2322_s26 + $0x8] sm:$0xff] %v1842_v36 }
 0x500   : > { %1678 = vst [vmem:[%s2322_s26 + $0x10] sm:$0xff] %v1842_v36  ;;  %1679 = vst [vmem:[%s2322_s26 + $0x18] sm:$0xff] %v1842_v36 }
 0x501 PF: > { %p1843_p8 = scmp.ne.s32.totalorder %s2217_s15, 1 }
 0x503   : > { %1683 = sbr.rel (%p1843_p8) target bundleno = 1290 (0x50a), region = 68 }
 0x508   : > { %v1684_v37 = vld [vmem:[#allocation2] sm:$0xff] }
 0x509   : > { %1685 = vst [vmem:[%s3085_s10] sm:$0xff] %v1684_v37 }
 0x50a PF: > { %s22_s17 = sadd.s32 1, %s2225_s17   ;;  %s3133_s15 = smov %s2221_s16 }
 0x50b   : > { %p19_p9 = scmp.ge.s32.totalorder %s22_s17, 4   ;;  %s3134_s16 = smov %s3136_s0 }
 0x50d   :  { %21 = sbr.rel (!%p19_p9) target bundleno = 2 (0x2), region = 120 }

</bundles_post_ra>
